<compile_context>
chip_gen: v5e
topology: v5e:2x2
jax: 0.10.0
libtpu: 0.0.40
codegen_flags: <defaults>
</compile_context>

<pallas_src>
import functools

import numpy as np
import jax
import jax.numpy as jnp
from jax import lax
from jax.experimental import pallas as pl
from jax.experimental.pallas import tpu as pltpu

N_PAD = 128   # pad box count to one full lane width
STRIP = 32    # row-strip height for the candidate-matrix build (vreg-pressure bound)


def _nms_kernel(count_ref, boxes_r_ref, boxes_c_ref, keep_ref, cmat_ref, *, thresh):
    n = keep_ref.shape[1]

    br = boxes_r_ref[...]                                   # (8, N): rows 0..3 = x1,y1,x2,y2
    x1r, y1r, x2r, y2r = br[0:1, :], br[1:2, :], br[2:3, :], br[3:4, :]   # (1, N)
    area_r = (x2r - x1r) * (y2r - y1r)                      # (1, N)

    col_i = lax.broadcasted_iota(jnp.int32, (STRIP, n), 1)  # hoisted, same for all strips

    # Candidate matrix C[i, j] = 1 iff higher-scored box i overlaps box j above
    # thresh, built strip-by-strip into VMEM scratch (f32 math, bf16 only at the
    # final store -> MXU-friendly on v5e/v6e/v7x; no integer MXU on v7x).
    for r0 in range(0, n, STRIP):
        bc = boxes_c_ref[r0:r0 + STRIP, :]                  # (STRIP, 8) static slice
        x1c, y1c, x2c, y2c = bc[:, 0:1], bc[:, 1:2], bc[:, 2:3], bc[:, 3:4]   # (STRIP, 1)
        area_c = (x2c - x1c) * (y2c - y1c)

        w = jnp.maximum(jnp.minimum(x2c, x2r) - jnp.maximum(x1c, x1r), 0.0)
        h = jnp.maximum(jnp.minimum(y2c, y2r) - jnp.maximum(y1c, y1r), 0.0)
        inter = w * h                                       # (STRIP, N)
        union = area_c + area_r - inter

        row_i = lax.broadcasted_iota(jnp.int32, (STRIP, n), 0) + r0
        # Divide-free threshold: inter/union > thresh  <=>  inter > thresh*union
        # (union > 0 for real boxes; padded zero boxes give 0 > 0 == False).
        cand = (inter > thresh * union) & (col_i > row_i)
        cmat_ref[r0:r0 + STRIP, :] = jnp.where(cand, 1.0, 0.0).astype(jnp.bfloat16)

    count = count_ref[0]            # real (unpadded) box count from SMEM scalar prefetch
    cmat = cmat_ref[...]            # loop-invariant (N, N) bf16, loaded once

    # Fixed point: keep^{t+1}[j] = (sum_i C[i,j]*keep^t[i] == 0).  Two matvec
    # steps per while iteration; equality after two steps implies the fixed
    # point is reached (the sequence provably converges, so no 2-cycles exist),
    # and `count` matvecs always suffice (suppression chains have depth < count).
    def cond(state):
        it, changed, _ = state
        return jnp.logical_and(changed > 0, it <= count)

    def body(state):
        it, _, keep = state                                  # keep: (1, N) f32 of 0/1
        supp1 = jnp.dot(keep.astype(jnp.bfloat16), cmat,
                        preferred_element_type=jnp.float32)  # (1, N)
        k1 = jnp.where(supp1 > 0.0, 0.0, 1.0)
        supp2 = jnp.dot(k1.astype(jnp.bfloat16), cmat,
                        preferred_element_type=jnp.float32)
        k2 = jnp.where(supp2 > 0.0, 0.0, 1.0)
        changed = (jnp.sum(jnp.abs(k2 - keep)) > 0.0).astype(jnp.int32)
        return it + 2, changed, k2

    init = (jnp.int32(0), jnp.int32(1), jnp.ones((1, n), jnp.float32))
    _, _, keep = lax.while_loop(cond, body, init)

    keep_ref[...] = keep.astype(jnp.int32)


def _nms_sorted(boxes, scores, thresh):
    """Runs the Pallas NMS kernel.

    Returns (order, keep_sorted) where `order` is the descending-score
    permutation and `keep_sorted[k]` tells whether box `order[k]` survives.
    """
    n = boxes.shape[0]
    assert n <= N_PAD, "increase N_PAD for more boxes"

    order = jnp.argsort(-scores.astype(jnp.float32))   # stable, descending score order
    boxes_sorted = boxes[order].astype(jnp.float32)

    boxes_c = jnp.zeros((N_PAD, 8), jnp.float32).at[:n, :4].set(boxes_sorted)
    boxes_r = boxes_c.T                                # (8, N_PAD)
    count = jnp.full((1,), n, jnp.int32)

    kernel = functools.partial(_nms_kernel, thresh=float(thresh))
    keep = pl.pallas_call(
        kernel,
        out_shape=jax.ShapeDtypeStruct((1, N_PAD), jnp.int32),
        grid_spec=pltpu.PrefetchScalarGridSpec(
            num_scalar_prefetch=1,            # real box count -> SMEM
            grid=(1,),
            in_specs=[
                pl.BlockSpec((8, N_PAD), lambda i, c: (0, 0)),
                pl.BlockSpec((N_PAD, 8), lambda i, c: (0, 0)),
            ],
            out_specs=pl.BlockSpec((1, N_PAD), lambda i, c: (0, 0)),
            scratch_shapes=[pltpu.VMEM((N_PAD, N_PAD), jnp.bfloat16)],
        ),
        compiler_params=pltpu.CompilerParams(dimension_semantics=("arbitrary",)),
    )(count, boxes_r, boxes_c)

    keep_sorted = keep[0, :n].astype(jnp.bool_)
    return order, keep_sorted


@functools.partial(jax.jit, static_argnums=(2,))
def nms_keep_mask(boxes, scores, thresh):
    """Boolean keep mask in ORIGINAL box order (for verification)."""
    n = boxes.shape[0]
    order, keep_sorted = _nms_sorted(boxes, scores, thresh)
    return jnp.zeros((n,), jnp.bool_).at[order].set(keep_sorted)


@functools.partial(jax.jit, static_argnums=(2,))
def nms_module_forward(boxes, scores, thresh, *others):
    """Equivalent of NMS.forward, fully on-device and jittable.

    torchvision nms returns kept indices in decreasing-score order and the
    module gathers [boxes, scores, *others] with them.
    # TODO(synk): a dynamic-length gather has no static-shape TPU equivalent,
    # so outputs are fixed-size: the first `num_kept` rows of each returned
    # tensor are the kept entries (decreasing score order, matching
    # torchvision); the remaining rows are padding.  Returns
    # (*gathered_padded, num_kept).
    """
    order, keep_sorted = _nms_sorted(boxes, scores, thresh)
    num_kept = jnp.sum(keep_sorted.astype(jnp.int32))
    # Stable argsort on the inverted mask compacts kept positions to the front
    # while preserving their (descending score) order.
    perm = jnp.argsort(jnp.logical_not(keep_sorted))
    keep_idx = order[perm]
    gathered = tuple(jnp.take(x, keep_idx, axis=0)
                     for x in (boxes, scores) + tuple(others))
    return gathered + (num_kept,)


def _nms_reference(boxes, scores, thresh):
    """Plain numpy greedy NMS (torchvision semantics) for verification."""
    boxes = np.asarray(boxes, np.float32)
    scores = np.asarray(scores, np.float32)
    order = np.argsort(-scores)
    keep = np.ones(len(boxes), dtype=bool)
    areas = (boxes[:, 2] - boxes[:, 0]) * (boxes[:, 3] - boxes[:, 1])
    for a in range(len(order)):
        i = order[a]
        if not keep[i]:
            continue
        for b in range(a + 1, len(order)):
            j = order[b]
            if not keep[j]:
                continue
            xx1 = max(boxes[i, 0], boxes[j, 0])
            yy1 = max(boxes[i, 1], boxes[j, 1])
            xx2 = min(boxes[i, 2], boxes[j, 2])
            yy2 = min(boxes[i, 3], boxes[j, 3])
            inter = max(xx2 - xx1, 0.0) * max(yy2 - yy1, 0.0)
            iou = inter / max(areas[i] + areas[j] - inter, 1e-9)
            if iou > thresh:
                keep[j] = False
    return keep


if __name__ == "__main__":
    key = jax.random.PRNGKey(0)
    k1, k2, k3, k4 = jax.random.split(key, 4)

    n = 50
    thresh = 0.5

    xy = jax.random.uniform(k1, (n, 2), jnp.float32, 0.0, 64.0)
    wh = jax.random.uniform(k2, (n, 2), jnp.float32, 4.0, 32.0)
    boxes = jnp.concatenate([xy, xy + wh], axis=1)          # (n, 4) x1,y1,x2,y2
    scores = jax.random.uniform(k3, (n,), jnp.float32)      # (n,)
    labels = jax.random.randint(k4, (n,), 0, 5, jnp.int32)  # extra "others" tensor

    out = nms_module_forward(boxes, scores, thresh, labels)
    *gathered, num_kept = out
    jax.block_until_ready(gathered)

    # --- correctness checks against the numpy reference ---
    ref_keep = _nms_reference(boxes, scores, thresh)
    pal_keep = np.asarray(jax.block_until_ready(nms_keep_mask(boxes, scores, thresh)))
    assert np.array_equal(pal_keep, ref_keep), (pal_keep, ref_keep)

    nk = int(num_kept)
    assert nk == int(ref_keep.sum())

    kept_boxes = np.asarray(gathered[0])[:nk]
    kept_scores = np.asarray(gathered[1])[:nk]
    kept_labels = np.asarray(gathered[2])[:nk]

    ref_order = np.argsort(-np.asarray(scores), kind="stable")
    ref_keep_idx = np.array([i for i in ref_order if ref_keep[i]], dtype=np.int64)
    assert np.array_equal(kept_boxes, np.asarray(boxes)[ref_keep_idx])
    assert np.array_equal(kept_scores, np.asarray(scores)[ref_keep_idx])
    assert np.array_equal(kept_labels, np.asarray(labels)[ref_keep_idx])

    print("KERNEL_OK")
</pallas_src>

<mosaic_0001>
module attributes {stable_mosaic.version = 11 : i64} {
  func.func @_nms_kernel(%arg0: i32, %arg1: memref<1xi32, #tpu.memory_space<smem>>, %arg2: memref<8x128xf32, #tpu.memory_space<vmem>>, %arg3: memref<128x8xf32, #tpu.memory_space<vmem>>, %arg4: memref<1x128xi32, #tpu.memory_space<vmem>>, %arg5: memref<128x128xbf16, #tpu.memory_space<vmem>>) attributes {dimension_semantics = [#tpu.dimension_semantics<arbitrary>], iteration_bounds = array<i64: 1>, scalar_prefetch = 1 : i64, scratch_operands = 1 : i64, tpu.core_type = #tpu.core_type<tc>, window_params = [{pipeline_mode = #tpu.pipeline_mode<synchronous>, transform_indices = @transform_0, window_bounds = array<i64: 8, 128>}, {pipeline_mode = #tpu.pipeline_mode<synchronous>, transform_indices = @transform_1, window_bounds = array<i64: 128, 8>}, {pipeline_mode = #tpu.pipeline_mode<synchronous>, transform_indices = @transform_2, window_bounds = array<i64: 1, 128>}]} {
    %c0 = arith.constant 0 : index
    %c0_0 = arith.constant 0 : index
    %0 = vector.load %arg2[%c0, %c0_0] : memref<8x128xf32, #tpu.memory_space<vmem>>, vector<8x128xf32>
    %1 = vector.extract_strided_slice %0 {offsets = [0, 0], sizes = [1, 128], strides = [1, 1]} : vector<8x128xf32> to vector<1x128xf32>
    %2 = vector.extract_strided_slice %0 {offsets = [1, 0], sizes = [1, 128], strides = [1, 1]} : vector<8x128xf32> to vector<1x128xf32>
    %3 = vector.extract_strided_slice %0 {offsets = [2, 0], sizes = [1, 128], strides = [1, 1]} : vector<8x128xf32> to vector<1x128xf32>
    %4 = vector.extract_strided_slice %0 {offsets = [3, 0], sizes = [1, 128], strides = [1, 1]} : vector<8x128xf32> to vector<1x128xf32>
    %5 = arith.subf %3, %1 : vector<1x128xf32>
    %6 = arith.subf %4, %2 : vector<1x128xf32>
    %7 = arith.mulf %5, %6 : vector<1x128xf32>
    %8 = tpu.iota {dimensions = array<i32: 1>} : vector<32x128xi32>
    %c0_1 = arith.constant 0 : index
    %c0_2 = arith.constant 0 : index
    %9 = vector.load %arg3[%c0_1, %c0_2] : memref<128x8xf32, #tpu.memory_space<vmem>>, vector<32x8xf32>
    %10 = vector.extract_strided_slice %9 {offsets = [0, 0], sizes = [32, 1], strides = [1, 1]} : vector<32x8xf32> to vector<32x1xf32>
    %11 = vector.extract_strided_slice %9 {offsets = [0, 1], sizes = [32, 1], strides = [1, 1]} : vector<32x8xf32> to vector<32x1xf32>
    %12 = vector.extract_strided_slice %9 {offsets = [0, 2], sizes = [32, 1], strides = [1, 1]} : vector<32x8xf32> to vector<32x1xf32>
    %13 = vector.extract_strided_slice %9 {offsets = [0, 3], sizes = [32, 1], strides = [1, 1]} : vector<32x8xf32> to vector<32x1xf32>
    %14 = arith.subf %12, %10 : vector<32x1xf32>
    %15 = arith.subf %13, %11 : vector<32x1xf32>
    %16 = arith.mulf %14, %15 : vector<32x1xf32>
    %17 = vector.broadcast %12 : vector<32x1xf32> to vector<32x128xf32>
    %18 = vector.broadcast %3 : vector<1x128xf32> to vector<32x128xf32>
    %19 = arith.minimumf %17, %18 : vector<32x128xf32>
    %20 = vector.broadcast %10 : vector<32x1xf32> to vector<32x128xf32>
    %21 = vector.broadcast %1 : vector<1x128xf32> to vector<32x128xf32>
    %22 = arith.maximumf %20, %21 : vector<32x128xf32>
    %23 = arith.subf %19, %22 : vector<32x128xf32>
    %cst = arith.constant 0.000000e+00 : f32
    %24 = vector.broadcast %cst : f32 to vector<32x128xf32>
    %25 = arith.maximumf %23, %24 : vector<32x128xf32>
    %26 = vector.broadcast %13 : vector<32x1xf32> to vector<32x128xf32>
    %27 = vector.broadcast %4 : vector<1x128xf32> to vector<32x128xf32>
    %28 = arith.minimumf %26, %27 : vector<32x128xf32>
    %29 = vector.broadcast %11 : vector<32x1xf32> to vector<32x128xf32>
    %30 = vector.broadcast %2 : vector<1x128xf32> to vector<32x128xf32>
    %31 = arith.maximumf %29, %30 : vector<32x128xf32>
    %32 = arith.subf %28, %31 : vector<32x128xf32>
    %cst_3 = arith.constant 0.000000e+00 : f32
    %33 = vector.broadcast %cst_3 : f32 to vector<32x128xf32>
    %34 = arith.maximumf %32, %33 : vector<32x128xf32>
    %35 = arith.mulf %25, %34 : vector<32x128xf32>
    %36 = vector.broadcast %16 : vector<32x1xf32> to vector<32x128xf32>
    %37 = vector.broadcast %7 : vector<1x128xf32> to vector<32x128xf32>
    %38 = arith.addf %36, %37 : vector<32x128xf32>
    %39 = arith.subf %38, %35 : vector<32x128xf32>
    %40 = tpu.iota {dimensions = array<i32: 0>} : vector<32x128xi32>
    %c0_i32 = arith.constant 0 : i32
    %41 = vector.broadcast %c0_i32 : i32 to vector<32x128xi32>
    %42 = arith.addi %40, %41 : vector<32x128xi32>
    %cst_4 = arith.constant 5.000000e-01 : f32
    %43 = vector.broadcast %cst_4 : f32 to vector<32x128xf32>
    %44 = arith.mulf %43, %39 : vector<32x128xf32>
    %45 = arith.cmpf ogt, %35, %44 : vector<32x128xf32>
    %46 = arith.cmpi sgt, %8, %42 : vector<32x128xi32>
    %47 = arith.andi %45, %46 : vector<32x128xi1>
    %cst_5 = arith.constant 1.000000e+00 : f32
    %cst_6 = arith.constant 0.000000e+00 : f32
    %48 = vector.broadcast %cst_5 : f32 to vector<32x128xf32>
    %49 = vector.broadcast %cst_6 : f32 to vector<32x128xf32>
    %50 = arith.select %47, %48, %49 : vector<32x128xi1>, vector<32x128xf32>
    %51 = arith.truncf %50 : vector<32x128xf32> to vector<32x128xbf16>
    %c0_7 = arith.constant 0 : index
    %c0_8 = arith.constant 0 : index
    %52 = vector.load %arg5[%c0_7, %c0_8] : memref<128x128xbf16, #tpu.memory_space<vmem>>, vector<32x128xbf16>
    tpu.vector_store %arg5[%c0_7, %c0_8], %51 {strides = array<i32>} : memref<128x128xbf16, #tpu.memory_space<vmem>>, vector<32x128xbf16>,
    %c32 = arith.constant 32 : index
    %c0_9 = arith.constant 0 : index
    %53 = vector.load %arg3[%c32, %c0_9] : memref<128x8xf32, #tpu.memory_space<vmem>>, vector<32x8xf32>
    %54 = vector.extract_strided_slice %53 {offsets = [0, 0], sizes = [32, 1], strides = [1, 1]} : vector<32x8xf32> to vector<32x1xf32>
    %55 = vector.extract_strided_slice %53 {offsets = [0, 1], sizes = [32, 1], strides = [1, 1]} : vector<32x8xf32> to vector<32x1xf32>
    %56 = vector.extract_strided_slice %53 {offsets = [0, 2], sizes = [32, 1], strides = [1, 1]} : vector<32x8xf32> to vector<32x1xf32>
    %57 = vector.extract_strided_slice %53 {offsets = [0, 3], sizes = [32, 1], strides = [1, 1]} : vector<32x8xf32> to vector<32x1xf32>
    %58 = arith.subf %56, %54 : vector<32x1xf32>
    %59 = arith.subf %57, %55 : vector<32x1xf32>
    %60 = arith.mulf %58, %59 : vector<32x1xf32>
    %61 = vector.broadcast %56 : vector<32x1xf32> to vector<32x128xf32>
    %62 = vector.broadcast %3 : vector<1x128xf32> to vector<32x128xf32>
    %63 = arith.minimumf %61, %62 : vector<32x128xf32>
    %64 = vector.broadcast %54 : vector<32x1xf32> to vector<32x128xf32>
    %65 = vector.broadcast %1 : vector<1x128xf32> to vector<32x128xf32>
    %66 = arith.maximumf %64, %65 : vector<32x128xf32>
    %67 = arith.subf %63, %66 : vector<32x128xf32>
    %cst_10 = arith.constant 0.000000e+00 : f32
    %68 = vector.broadcast %cst_10 : f32 to vector<32x128xf32>
    %69 = arith.maximumf %67, %68 : vector<32x128xf32>
    %70 = vector.broadcast %57 : vector<32x1xf32> to vector<32x128xf32>
    %71 = vector.broadcast %4 : vector<1x128xf32> to vector<32x128xf32>
    %72 = arith.minimumf %70, %71 : vector<32x128xf32>
    %73 = vector.broadcast %55 : vector<32x1xf32> to vector<32x128xf32>
    %74 = vector.broadcast %2 : vector<1x128xf32> to vector<32x128xf32>
    %75 = arith.maximumf %73, %74 : vector<32x128xf32>
    %76 = arith.subf %72, %75 : vector<32x128xf32>
    %cst_11 = arith.constant 0.000000e+00 : f32
    %77 = vector.broadcast %cst_11 : f32 to vector<32x128xf32>
    %78 = arith.maximumf %76, %77 : vector<32x128xf32>
    %79 = arith.mulf %69, %78 : vector<32x128xf32>
    %80 = vector.broadcast %60 : vector<32x1xf32> to vector<32x128xf32>
    %81 = vector.broadcast %7 : vector<1x128xf32> to vector<32x128xf32>
    %82 = arith.addf %80, %81 : vector<32x128xf32>
    %83 = arith.subf %82, %79 : vector<32x128xf32>
    %84 = tpu.iota {dimensions = array<i32: 0>} : vector<32x128xi32>
    %c32_i32 = arith.constant 32 : i32
    %85 = vector.broadcast %c32_i32 : i32 to vector<32x128xi32>
    %86 = arith.addi %84, %85 : vector<32x128xi32>
    %cst_12 = arith.constant 5.000000e-01 : f32
    %87 = vector.broadcast %cst_12 : f32 to vector<32x128xf32>
    %88 = arith.mulf %87, %83 : vector<32x128xf32>
    %89 = arith.cmpf ogt, %79, %88 : vector<32x128xf32>
    %90 = arith.cmpi sgt, %8, %86 : vector<32x128xi32>
    %91 = arith.andi %89, %90 : vector<32x128xi1>
    %cst_13 = arith.constant 1.000000e+00 : f32
    %cst_14 = arith.constant 0.000000e+00 : f32
    %92 = vector.broadcast %cst_13 : f32 to vector<32x128xf32>
    %93 = vector.broadcast %cst_14 : f32 to vector<32x128xf32>
    %94 = arith.select %91, %92, %93 : vector<32x128xi1>, vector<32x128xf32>
    %95 = arith.truncf %94 : vector<32x128xf32> to vector<32x128xbf16>
    %c32_15 = arith.constant 32 : index
    %c0_16 = arith.constant 0 : index
    %96 = vector.load %arg5[%c32_15, %c0_16] : memref<128x128xbf16, #tpu.memory_space<vmem>>, vector<32x128xbf16>
    tpu.vector_store %arg5[%c32_15, %c0_16], %95 {strides = array<i32>} : memref<128x128xbf16, #tpu.memory_space<vmem>>, vector<32x128xbf16>,
    %c64 = arith.constant 64 : index
    %c0_17 = arith.constant 0 : index
    %97 = vector.load %arg3[%c64, %c0_17] : memref<128x8xf32, #tpu.memory_space<vmem>>, vector<32x8xf32>
    %98 = vector.extract_strided_slice %97 {offsets = [0, 0], sizes = [32, 1], strides = [1, 1]} : vector<32x8xf32> to vector<32x1xf32>
    %99 = vector.extract_strided_slice %97 {offsets = [0, 1], sizes = [32, 1], strides = [1, 1]} : vector<32x8xf32> to vector<32x1xf32>
    %100 = vector.extract_strided_slice %97 {offsets = [0, 2], sizes = [32, 1], strides = [1, 1]} : vector<32x8xf32> to vector<32x1xf32>
    %101 = vector.extract_strided_slice %97 {offsets = [0, 3], sizes = [32, 1], strides = [1, 1]} : vector<32x8xf32> to vector<32x1xf32>
    %102 = arith.subf %100, %98 : vector<32x1xf32>
    %103 = arith.subf %101, %99 : vector<32x1xf32>
    %104 = arith.mulf %102, %103 : vector<32x1xf32>
    %105 = vector.broadcast %100 : vector<32x1xf32> to vector<32x128xf32>
    %106 = vector.broadcast %3 : vector<1x128xf32> to vector<32x128xf32>
    %107 = arith.minimumf %105, %106 : vector<32x128xf32>
    %108 = vector.broadcast %98 : vector<32x1xf32> to vector<32x128xf32>
    %109 = vector.broadcast %1 : vector<1x128xf32> to vector<32x128xf32>
    %110 = arith.maximumf %108, %109 : vector<32x128xf32>
    %111 = arith.subf %107, %110 : vector<32x128xf32>
    %cst_18 = arith.constant 0.000000e+00 : f32
    %112 = vector.broadcast %cst_18 : f32 to vector<32x128xf32>
    %113 = arith.maximumf %111, %112 : vector<32x128xf32>
    %114 = vector.broadcast %101 : vector<32x1xf32> to vector<32x128xf32>
    %115 = vector.broadcast %4 : vector<1x128xf32> to vector<32x128xf32>
    %116 = arith.minimumf %114, %115 : vector<32x128xf32>
    %117 = vector.broadcast %99 : vector<32x1xf32> to vector<32x128xf32>
    %118 = vector.broadcast %2 : vector<1x128xf32> to vector<32x128xf32>
    %119 = arith.maximumf %117, %118 : vector<32x128xf32>
    %120 = arith.subf %116, %119 : vector<32x128xf32>
    %cst_19 = arith.constant 0.000000e+00 : f32
    %121 = vector.broadcast %cst_19 : f32 to vector<32x128xf32>
    %122 = arith.maximumf %120, %121 : vector<32x128xf32>
    %123 = arith.mulf %113, %122 : vector<32x128xf32>
    %124 = vector.broadcast %104 : vector<32x1xf32> to vector<32x128xf32>
    %125 = vector.broadcast %7 : vector<1x128xf32> to vector<32x128xf32>
    %126 = arith.addf %124, %125 : vector<32x128xf32>
    %127 = arith.subf %126, %123 : vector<32x128xf32>
    %128 = tpu.iota {dimensions = array<i32: 0>} : vector<32x128xi32>
    %c64_i32 = arith.constant 64 : i32
    %129 = vector.broadcast %c64_i32 : i32 to vector<32x128xi32>
    %130 = arith.addi %128, %129 : vector<32x128xi32>
    %cst_20 = arith.constant 5.000000e-01 : f32
    %131 = vector.broadcast %cst_20 : f32 to vector<32x128xf32>
    %132 = arith.mulf %131, %127 : vector<32x128xf32>
    %133 = arith.cmpf ogt, %123, %132 : vector<32x128xf32>
    %134 = arith.cmpi sgt, %8, %130 : vector<32x128xi32>
    %135 = arith.andi %133, %134 : vector<32x128xi1>
    %cst_21 = arith.constant 1.000000e+00 : f32
    %cst_22 = arith.constant 0.000000e+00 : f32
    %136 = vector.broadcast %cst_21 : f32 to vector<32x128xf32>
    %137 = vector.broadcast %cst_22 : f32 to vector<32x128xf32>
    %138 = arith.select %135, %136, %137 : vector<32x128xi1>, vector<32x128xf32>
    %139 = arith.truncf %138 : vector<32x128xf32> to vector<32x128xbf16>
    %c64_23 = arith.constant 64 : index
    %c0_24 = arith.constant 0 : index
    %140 = vector.load %arg5[%c64_23, %c0_24] : memref<128x128xbf16, #tpu.memory_space<vmem>>, vector<32x128xbf16>
    tpu.vector_store %arg5[%c64_23, %c0_24], %139 {strides = array<i32>} : memref<128x128xbf16, #tpu.memory_space<vmem>>, vector<32x128xbf16>,
    %c96 = arith.constant 96 : index
    %c0_25 = arith.constant 0 : index
    %141 = vector.load %arg3[%c96, %c0_25] : memref<128x8xf32, #tpu.memory_space<vmem>>, vector<32x8xf32>
    %142 = vector.extract_strided_slice %141 {offsets = [0, 0], sizes = [32, 1], strides = [1, 1]} : vector<32x8xf32> to vector<32x1xf32>
    %143 = vector.extract_strided_slice %141 {offsets = [0, 1], sizes = [32, 1], strides = [1, 1]} : vector<32x8xf32> to vector<32x1xf32>
    %144 = vector.extract_strided_slice %141 {offsets = [0, 2], sizes = [32, 1], strides = [1, 1]} : vector<32x8xf32> to vector<32x1xf32>
    %145 = vector.extract_strided_slice %141 {offsets = [0, 3], sizes = [32, 1], strides = [1, 1]} : vector<32x8xf32> to vector<32x1xf32>
    %146 = arith.subf %144, %142 : vector<32x1xf32>
    %147 = arith.subf %145, %143 : vector<32x1xf32>
    %148 = arith.mulf %146, %147 : vector<32x1xf32>
    %149 = vector.broadcast %144 : vector<32x1xf32> to vector<32x128xf32>
    %150 = vector.broadcast %3 : vector<1x128xf32> to vector<32x128xf32>
    %151 = arith.minimumf %149, %150 : vector<32x128xf32>
    %152 = vector.broadcast %142 : vector<32x1xf32> to vector<32x128xf32>
    %153 = vector.broadcast %1 : vector<1x128xf32> to vector<32x128xf32>
    %154 = arith.maximumf %152, %153 : vector<32x128xf32>
    %155 = arith.subf %151, %154 : vector<32x128xf32>
    %cst_26 = arith.constant 0.000000e+00 : f32
    %156 = vector.broadcast %cst_26 : f32 to vector<32x128xf32>
    %157 = arith.maximumf %155, %156 : vector<32x128xf32>
    %158 = vector.broadcast %145 : vector<32x1xf32> to vector<32x128xf32>
    %159 = vector.broadcast %4 : vector<1x128xf32> to vector<32x128xf32>
    %160 = arith.minimumf %158, %159 : vector<32x128xf32>
    %161 = vector.broadcast %143 : vector<32x1xf32> to vector<32x128xf32>
    %162 = vector.broadcast %2 : vector<1x128xf32> to vector<32x128xf32>
    %163 = arith.maximumf %161, %162 : vector<32x128xf32>
    %164 = arith.subf %160, %163 : vector<32x128xf32>
    %cst_27 = arith.constant 0.000000e+00 : f32
    %165 = vector.broadcast %cst_27 : f32 to vector<32x128xf32>
    %166 = arith.maximumf %164, %165 : vector<32x128xf32>
    %167 = arith.mulf %157, %166 : vector<32x128xf32>
    %168 = vector.broadcast %148 : vector<32x1xf32> to vector<32x128xf32>
    %169 = vector.broadcast %7 : vector<1x128xf32> to vector<32x128xf32>
    %170 = arith.addf %168, %169 : vector<32x128xf32>
    %171 = arith.subf %170, %167 : vector<32x128xf32>
    %172 = tpu.iota {dimensions = array<i32: 0>} : vector<32x128xi32>
    %c96_i32 = arith.constant 96 : i32
    %173 = vector.broadcast %c96_i32 : i32 to vector<32x128xi32>
    %174 = arith.addi %172, %173 : vector<32x128xi32>
    %cst_28 = arith.constant 5.000000e-01 : f32
    %175 = vector.broadcast %cst_28 : f32 to vector<32x128xf32>
    %176 = arith.mulf %175, %171 : vector<32x128xf32>
    %177 = arith.cmpf ogt, %167, %176 : vector<32x128xf32>
    %178 = arith.cmpi sgt, %8, %174 : vector<32x128xi32>
    %179 = arith.andi %177, %178 : vector<32x128xi1>
    %cst_29 = arith.constant 1.000000e+00 : f32
    %cst_30 = arith.constant 0.000000e+00 : f32
    %180 = vector.broadcast %cst_29 : f32 to vector<32x128xf32>
    %181 = vector.broadcast %cst_30 : f32 to vector<32x128xf32>
    %182 = arith.select %179, %180, %181 : vector<32x128xi1>, vector<32x128xf32>
    %183 = arith.truncf %182 : vector<32x128xf32> to vector<32x128xbf16>
    %c96_31 = arith.constant 96 : index
    %c0_32 = arith.constant 0 : index
    %184 = vector.load %arg5[%c96_31, %c0_32] : memref<128x128xbf16, #tpu.memory_space<vmem>>, vector<32x128xbf16>
    tpu.vector_store %arg5[%c96_31, %c0_32], %183 {strides = array<i32>} : memref<128x128xbf16, #tpu.memory_space<vmem>>, vector<32x128xbf16>,
    %c0_33 = arith.constant 0 : index
    %185 = memref.load %arg1[%c0_33] : memref<1xi32, #tpu.memory_space<smem>>
    %c0_34 = arith.constant 0 : index
    %c0_35 = arith.constant 0 : index
    %186 = vector.load %arg5[%c0_34, %c0_35] : memref<128x128xbf16, #tpu.memory_space<vmem>>, vector<128x128xbf16>
    %cst_36 = arith.constant 1.000000e+00 : f32
    %187 = vector.broadcast %cst_36 : f32 to vector<1x128xf32>
    %c0_i32_37 = arith.constant 0 : i32
    %c1_i32 = arith.constant 1 : i32
    %188:3 = scf.while (%arg6 = %c0_i32_37, %arg7 = %c1_i32, %arg8 = %187) : (i32, i32, vector<1x128xf32>) -> (i32, i32, vector<1x128xf32>) {
      %c0_i32_40 = arith.constant 0 : i32
      %191 = arith.cmpi sgt, %arg7, %c0_i32_40 : i32
      %192 = arith.cmpi sle, %arg6, %185 : i32
      %193 = arith.andi %191, %192 : i1
      scf.condition(%193) %arg6, %arg7, %arg8 : i32, i32, vector<1x128xf32>
    } do {
    ^bb0(%arg6: i32, %arg7: i32, %arg8: vector<1x128xf32>):
      %191 = arith.truncf %arg8 : vector<1x128xf32> to vector<1x128xbf16>
      %cst_40 = arith.constant dense<0.000000e+00> : vector<1x128xf32>
      %192 = tpu.matmul %191, %186, %cst_40 {dimension_numbers = #tpu.dot_dimension_numbers<[1], [0], [0], [1], [0, 0, 1, 1], [], []>} : vector<1x128xbf16>, vector<128x128xbf16>, vector<1x128xf32> -> vector<1x128xf32>
      %cst_41 = arith.constant 0.000000e+00 : f32
      %193 = vector.broadcast %cst_41 : f32 to vector<1x128xf32>
      %194 = arith.cmpf ogt, %192, %193 : vector<1x128xf32>
      %cst_42 = arith.constant 0.000000e+00 : f32
      %cst_43 = arith.constant 1.000000e+00 : f32
      %195 = vector.broadcast %cst_42 : f32 to vector<1x128xf32>
      %196 = vector.broadcast %cst_43 : f32 to vector<1x128xf32>
      %197 = arith.select %194, %195, %196 : vector<1x128xi1>, vector<1x128xf32>
      %198 = arith.truncf %197 : vector<1x128xf32> to vector<1x128xbf16>
      %cst_44 = arith.constant dense<0.000000e+00> : vector<1x128xf32>
      %199 = tpu.matmul %198, %186, %cst_44 {dimension_numbers = #tpu.dot_dimension_numbers<[1], [0], [0], [1], [0, 0, 1, 1], [], []>} : vector<1x128xbf16>, vector<128x128xbf16>, vector<1x128xf32> -> vector<1x128xf32>
      %cst_45 = arith.constant 0.000000e+00 : f32
      %200 = vector.broadcast %cst_45 : f32 to vector<1x128xf32>
      %201 = arith.cmpf ogt, %199, %200 : vector<1x128xf32>
      %cst_46 = arith.constant 0.000000e+00 : f32
      %cst_47 = arith.constant 1.000000e+00 : f32
      %202 = vector.broadcast %cst_46 : f32 to vector<1x128xf32>
      %203 = vector.broadcast %cst_47 : f32 to vector<1x128xf32>
      %204 = arith.select %201, %202, %203 : vector<1x128xi1>, vector<1x128xf32>
      %205 = arith.subf %204, %arg8 : vector<1x128xf32>
      %206 = math.absf %205 : vector<1x128xf32>
      %207 = vector.shape_cast %206 : vector<1x128xf32> to vector<1x1x128xf32>
      %cst_48 = arith.constant dense<0.000000e+00> : vector<1xf32>
      %208 = vector.multi_reduction <add>, %207, %cst_48 [1, 2] : vector<1x1x128xf32> to vector<1xf32>
      %209 = vector.shape_cast %208 : vector<1xf32> to vector<1x1x1xf32>
      %210 = vector.extract %209[0, 0, 0] : f32 from vector<1x1x1xf32>
      %cst_49 = arith.constant 0.000000e+00 : f32
      %211 = arith.cmpf ogt, %210, %cst_49 : f32
      %212 = arith.extui %211 : i1 to i32
      %c2_i32 = arith.constant 2 : i32
      %213 = arith.addi %arg6, %c2_i32 : i32
      scf.yield %213, %212, %204 : i32, i32, vector<1x128xf32>
    }
    %189 = arith.fptosi %188#2 : vector<1x128xf32> to vector<1x128xi32>
    %c0_38 = arith.constant 0 : index
    %c0_39 = arith.constant 0 : index
    %190 = vector.load %arg4[%c0_38, %c0_39] : memref<1x128xi32, #tpu.memory_space<vmem>>, vector<1x128xi32>
    tpu.vector_store %arg4[%c0_38, %c0_39], %189 {strides = array<i32>} : memref<1x128xi32, #tpu.memory_space<vmem>>, vector<1x128xi32>,
    return
  }
  func.func @transform_0(%arg0: i32, %arg1: memref<1xi32, #tpu.memory_space<smem>>) -> (i32, i32) {
    %c0_i32 = arith.constant 0 : i32
    %c0_i32_0 = arith.constant 0 : i32
    %c0_i32_1 = arith.constant 0 : i32
    return %c0_i32, %c0_i32_0 : i32, i32
  }
  func.func @transform_1(%arg0: i32, %arg1: memref<1xi32, #tpu.memory_space<smem>>) -> (i32, i32) {
    %c0_i32 = arith.constant 0 : i32
    %c0_i32_0 = arith.constant 0 : i32
    %c0_i32_1 = arith.constant 0 : i32
    return %c0_i32, %c0_i32_0 : i32, i32
  }
  func.func @transform_2(%arg0: i32, %arg1: memref<1xi32, #tpu.memory_space<smem>>) -> (i32, i32) {
    %c0_i32 = arith.constant 0 : i32
    %c0_i32_0 = arith.constant 0 : i32
    %c0_i32_1 = arith.constant 0 : i32
    return %c0_i32, %c0_i32_0 : i32, i32
  }
}

</mosaic_0001>

<bundles_post_ra>
// kernel: neg.1
= control target key start
LH: loop header
LB: loop body
LE: loop exit
PB: predicated region body
PF: predicated region fallthrough
CT: control target
= control target key end

     0   :  { %s24_s0 = inlined_call_operand.vmem [shape: f32[50], index: 0, kind: input, shape index: {}]   ;;  %s25_s1 = inlined_call_operand.vmem [shape: f32[50], index: 1, kind: output, shape index: {}]  }
   0x1   :  { %v2_v0 = vld [vmem:[%s24_s0] sm:$0x1] }
   0x2   :  { %v5_v1 = vxor.u32 2147483648, %v2_v0 }
   0x4   :  { %7 = vst [vmem:[%s25_s1] sm:$0x1] %v5_v1 }

// kernel: nms_module_forward.1
= control target key start
LH: loop header
LB: loop body
LE: loop exit
PB: predicated region body
PF: predicated region fallthrough
CT: control target
= control target key end

     0   :  { %v1838_v0 = vmov 2   ;;  %s1168_s16 = smov 2   ;;  %v1169_v5 = vmov 0   ;;  %v1842_v7 = vmov 3   ;;  %v1840_v9 = vmov 1   ;;  %s1172_s29 = smov 127   ;;  %s1834_s2 = inlined_call_operand.vmem [shape: f32[128,8], index: 2, kind: input, shape index: {}]   ;;  %s1835_s1 = inlined_call_operand.vmem [shape: f32[8,128], index: 1, kind: input, shape index: {}]   ;;  %s1836_s0 = inlined_call_operand.<no memory space> [shape: s32[1], index: 0, kind: input, shape index: {}]   ;;  %s1837_s3 = inlined_call_operand.vmem [shape: s32[1,128], index: 3, kind: output, shape index: {}]  }
   0x1   :  { %1104 = vset.pattern.permute.xlu2 %v1838_v0  ;;  %v1200_v1 = vld [vmem:[%s1834_s2 + $0x10] sm:$0xff]  ;;  %v24_v2 = vld [vmem:[%s1834_s2] sm:$0xff]  ;;  %1106 = vset.pattern.permute.xlu1 %v1838_v0  ;;  %v1213_v3 = vld [vmem:[%s1834_s2 + $0x18] sm:$0xff]  ;;  %p986_p0 = scmp.ge.s32.totalorder %s1836_s0, 0 }
   0x2   :  { %36 = vrot.lane.b32.xlu1 %v1200_v1, %s1168_s16  ;;  %69 = vperm.xlu2 %1104, %v24_v2   ;;  %v25_v4 = vld [vmem:[%s1834_s2 + $0x8] sm:$0xff]  ;;  %v1236_v8 = vld [vmem:[%s1834_s2 + $0x30] sm:$0xff]  ;;  %v1248_v10 = vld [vmem:[%s1834_s2 + $0x20] sm:$0xff]  ;;  %s1798_s21 = smov (%p986_p0), 0  }
   0x3   :  { %32 = vrot.lane.b32.xlu0 %v24_v2, %s1168_s16  ;;  %v1227_v6 = vld [vmem:[%s1834_s2 + $0x28] sm:$0xff]  ;;  %v1257_v11 = vld [vmem:[%s1834_s2 + $0x38] sm:$0xff]  ;;  %v1292_v24 = vld [vmem:[%s1835_s1] sm:$0xff] }
   0x4   :  { %1105 = vset.pattern.permute.xlu0 %v1838_v0  ;;  %v1297_v26 = vperm.slane %v1292_v24, 0  ;;  %v1302_v27 = vperm.slane %v1292_v24, 2  ;;  %v1323_v46 = vperm.slane %v1292_v24, 1  ;;  %v1331_v48 = vperm.slane %v1292_v24, 3  ;;  %v1339_v52 = vld [vmem:[%s1834_s2 + $0x40] sm:$0xff]  ;;  %v1349_v57 = vld [vmem:[%s1834_s2 + $0x48] sm:$0xff] }
   0x5   :  { %v1356_v61 = vld [vmem:[%s1834_s2 + $0x58] sm:$0xff] }
   0xa   :  { %38 = vrot.lane.b32.xlu1 %v1213_v3, %s1168_s16  ;;  %81 = vperm.xlu2 %1104, %v1213_v3  }
   0xb   :  { %34 = vrot.lane.b32.xlu0 %v25_v4, %s1168_s16 }
  0x12   :  { %77 = vperm.xlu1 %1106, %v1200_v1   ;;  %1108 = vset.pattern.permute.xlu2 %v1169_v5 }
  0x13   :  { %73 = vperm.xlu0 %1105, %v25_v4   ;;  %94 = vperm.xlu2 %1108, %v25_v4  }
  0x1a   :  { %1107 = vset.pattern.permute.xlu1 %v1169_v5 }
  0x1b   :  { %244 = vrot.lane.b32.xlu0 %v1227_v6, %s1168_s16  ;;  %90 = vperm.xlu1 %1107, %v24_v2  }
  0x1c   :  { %1109 = vset.pattern.permute.xlu2 %v1842_v7 }
  0x1d   :  { %119 = vperm.xlu2 %1109, %v24_v2  }
  0x23   :  { %102 = vperm.xlu1 %1107, %v1213_v3   ;;  %287 = vperm.xlu0 %1105, %v1236_v8  }
  0x25   :  { %127 = vperm.xlu2 %1109, %v1200_v1  }
  0x2b   :  { %1110 = vset.pattern.permute.xlu1 %v1842_v7 }
  0x2c   :  { %123 = vperm.xlu1 %1110, %v25_v4  }
  0x2d   :  { %1112 = vset.pattern.permute.xlu2 %v1840_v9 }
  0x2e   :  { %144 = vperm.xlu2 %1112, %v25_v4  }
  0x34   :  { %1111 = vset.pattern.permute.xlu1 %v1840_v9 }
  0x35   :  { %140 = vperm.xlu1 %1111, %v24_v2  }
  0x36   :  { %152 = vperm.xlu2 %1112, %v1213_v3  }
  0x3d   :  { %148 = vperm.xlu1 %1111, %v1200_v1  }
  0x3e   :  { %242 = vrot.lane.b32.xlu2 %v1248_v10, %s1168_s16 }
  0x3f   :  { %1114 = vset.pattern.permute.xlu2 %v1838_v0 }
  0x45   :  { %246 = vrot.lane.b32.xlu1 %v1236_v8, %s1168_s16 }
  0x46   :  { %1113 = vset.pattern.permute.xlu1 %v1838_v0  ;;  %248 = vrot.lane.b32.xlu2 %v1257_v11, %s1168_s16 }
  0x4d   :  { %279 = vperm.xlu1 %1113, %v1248_v10  }
  0x4e   :  { %283 = vperm.xlu2 %1114, %v1227_v6  }
  0x55   :  { %291 = vperm.xlu1 %1113, %v1257_v11  }
  0x56   :  { %1115 = vset.pattern.permute.xlu2 %v1169_v5 }
  0x57   :  { %299 = vperm.xlu2 %1115, %v1248_v10  }
  0x5c   :  { %v70_v12 = vpop.permute.xlu2 %69 }
  0x5d   :  { %1116 = vset.pattern.permute.xlu1 %v1169_v5  ;;  %v85_v36 = vmin.f32 %v70_v12, %v1302_v27 }
  0x5e   :  { %307 = vperm.xlu1 %1116, %v1236_v8  }
  0x5f   :  { %311 = vperm.xlu2 %1115, %v1257_v11  }
  0x64   :  { %v82_v13 = vpop.permute.xlu2 %81 }
  0x65   :  { %v88_v42 = vmin.f32 %v82_v13, %v1302_v27 }
  0x66   :  { %1117 = vset.pattern.permute.xlu1 %v1842_v7 }
  0x67   :  { %327 = vperm.xlu1 %1117, %v1248_v10   ;;  %1118 = vset.pattern.permute.xlu2 %v1842_v7 }
  0x6d   :  { %v95_v14 = vpop.permute.xlu2 %94 }
  0x6e   :  { %v107_v28 = vmax.f32 %v95_v14, %v1297_v26 }
  0x74   :  { %v37_v15 = vpop.permute.xlu1 %36 }
  0x75   :  { %v1276_v16 = vsub.f32 %v1200_v1, %v37_v15  ;;  %v33_v17 = vpop.permute.xlu0 %32 }
  0x76   :  { %v1278_v18 = vsub.f32 %v24_v2, %v33_v17 }
  0x77   :  { %v120_v19 = vpop.permute.xlu2 %119  ;;  %56 = vrot.lane.b32.xlu0 %v1276_v16, %s1172_s29 }
  0x78   :  { %52 = vrot.lane.b32.xlu2 %v1278_v18, %s1172_s29  ;;  %v135_v59 = vmin.f32 %v120_v19, %v1331_v48 }
  0x7c   :  { %v39_v20 = vpop.permute.xlu1 %38 }
  0x7d   :  { %v1285_v21 = vsub.f32 %v1213_v3, %v39_v20  ;;  %v35_v22 = vpop.permute.xlu0 %34 }
  0x7e   :  { %v1287_v23 = vsub.f32 %v25_v4, %v35_v22 }
  0x7f   :  { %58 = vrot.lane.b32.xlu1 %v1285_v21, %s1172_s29  ;;  %v128_v25 = vpop.permute.xlu2 %127 }
  0x80   :  { %54 = vrot.lane.b32.xlu2 %v1287_v23, %s1172_s29  ;;  %v137_v15 = vmin.f32 %v128_v25, %v1331_v48 }
  0x84   :  { %v1305_v29 = vpop.permute.xlu1 %77 }
  0x85   :  { %v74_v30 = vpop.permute.xlu0 %73 }
  0x86   :  { %v86_v31 = vmin.f32 %v74_v30, %v1302_v27 }
  0x88   :  { %v111_v32 = vsub.f32 %v86_v31, %v107_v28  ;;  %v145_v33 = vpop.permute.xlu2 %144 }
  0x89   :  { %v157_v49 = vmax.f32 %v145_v33, %v1323_v46 }
  0x8a   :  { %v115_v54 = vmax.f32 %v111_v32, 0.0 }
  0x8d   :  { %v245_v34 = vpop.permute.xlu0 %244  ;;  %v91_v35 = vpop.permute.xlu1 %90 }
  0x8e   :  { %v1310_v37 = vsub.f32 %v1227_v6, %v245_v34  ;;  %v106_v38 = vmax.f32 %v91_v35, %v1297_v26 }
  0x90   :  { %v110_v39 = vsub.f32 %v85_v36, %v106_v38  ;;  %v1313_v40 = vpop.permute.xlu2 %152  ;;  %264 = vrot.lane.b32.xlu1 %v1310_v37, %s1172_s29 }
  0x92   :  { %v114_v2 = vmax.f32 %v110_v39, 0.0 }
  0x95   :  { %v103_v41 = vpop.permute.xlu1 %102 }
  0x96   :  { %v109_v43 = vmax.f32 %v103_v41, %v1297_v26  ;;  %v1394_v41 = vld [vmem:[%s1834_s2 + $0x50] sm:$0xff] }
  0x98   :  { %v1319_v44 = vsub.f32 %v88_v42, %v109_v43  ;;  %v243_v45 = vpop.permute.xlu2 %242  ;;  %339 = vperm.xlu1 %1117, %v1257_v11  }
  0x99   :  { %v1326_v47 = vsub.f32 %v1248_v10, %v243_v45 }
  0x9b   :  { %262 = vrot.lane.b32.xlu0 %v1326_v47, %s1172_s29 }
  0x9e   :  { %v124_v50 = vpop.permute.xlu1 %123 }
  0x9f   :  { %v136_v51 = vmin.f32 %v124_v50, %v1331_v48 }
  0xa0   :  { %1120 = vset.pattern.permute.xlu1 %v1840_v9  ;;  %v249_v62 = vpop.permute.xlu2 %248 }
  0xa1   :  { %v161_v53 = vsub.f32 %v136_v51, %v157_v49  ;;  %351 = vperm.xlu1 %1120, %v1227_v6   ;;  %v1366_v14 = vsub.f32 %v1257_v11, %v249_v62  ;;  %v1401_v49 = vpop.permute.xlu0 %287 }
  0xa3   :  { %v165_v55 = vmax.f32 %v161_v53, 0.0  ;;  %446 = vrot.lane.b32.xlu0 %v1339_v52, %s1168_s16 }
  0xa5   :  { %v1344_v56 = vmul.f32 %v165_v55, %v115_v54 }
  0xa7   :  { %v141_v58 = vpop.permute.xlu1 %140 }
  0xa8   :  { %v156_v60 = vmax.f32 %v141_v58, %v1323_v46  ;;  %v1370_v19 = vpop.permute.xlu2 %283 }
  0xa9   :  { %448 = vrot.lane.b32.xlu1 %v1349_v57, %s1168_s16 }
  0xaa   :  { %v160_v63 = vsub.f32 %v135_v59, %v156_v60  ;;  %1122 = vset.pattern.permute.xlu1 %v1838_v0 }
  0xab   :  { %452 = vrot.lane.b32.xlu0 %v1356_v61, %s1168_s16 }
  0xac   :  { %v164_v4 = vmax.f32 %v160_v63, 0.0 }
  0xae   :  { %v1363_v12 = vmul.f32 %v164_v4, %v114_v2 }
  0xaf   :  { %v149_v13 = vpop.permute.xlu1 %148 }
  0xb0   :  { %v158_v17 = vmax.f32 %v149_v13, %v1323_v46 }
  0xb1   :  { %v300_v30 = vpop.permute.xlu2 %299 }
  0xb2   :  { %v1372_v20 = vsub.f32 %v137_v15, %v158_v17  ;;  %v314_v31 = vmax.f32 %v300_v30, %v1297_v26 }
  0xb3   :  { %268 = vrot.lane.b32.xlu0 %v1366_v14, %s1172_s29 }
  0xb7   :  { %v247_v22 = vpop.permute.xlu1 %246 }
  0xb8   :  { %v1377_v28 = vsub.f32 %v1236_v8, %v247_v22 }
  0xb9   :  { %v312_v34 = vpop.permute.xlu2 %311 }
  0xba   :  { %266 = vrot.lane.b32.xlu2 %v1377_v28, %s1172_s29  ;;  %v317_v35 = vmax.f32 %v312_v34, %v1297_v26 }
  0xbf   :  { %v280_v25 = vpop.permute.xlu1 %279 }
  0xc0   :  { %v294_v32 = vmin.f32 %v280_v25, %v1302_v27 }
  0xc2   :  { %v318_v33 = vsub.f32 %v294_v32, %v314_v31  ;;  %331 = vperm.xlu2 %1118, %v1227_v6  }
  0xc7   :  { %v292_v36 = vpop.permute.xlu1 %291 }
  0xc8   :  { %v297_v38 = vmin.f32 %v292_v36, %v1302_v27 }
  0xca   :  { %v1386_v39 = vsub.f32 %v297_v38, %v317_v35  ;;  %1119 = vset.pattern.permute.xlu2 %v1840_v9  ;;  %v322_v35 = vmax.f32 %v318_v33, 0.0 }
  0xcb   :  { %347 = vperm.xlu2 %1119, %v1248_v10  }
  0xd0   :  { %v1399_v42 = vpop.permute.xlu1 %307 }
  0xd2   :  { %v53_v50 = vpop.permute.xlu2 %52 }
  0xd3   :  { %355 = vperm.xlu2 %1119, %v1236_v8   ;;  %v64_v33 = vmul.f32 %v53_v50, %v1278_v18 }
  0xd9   :  { %v328_v43 = vpop.permute.xlu1 %327 }
  0xda   :  { %v55_v54 = vpop.permute.xlu2 %54  ;;  %v342_v31 = vmin.f32 %v328_v43, %v1331_v48 }
  0xdb   :  { %450 = vrot.lane.b32.xlu2 %v1394_v41, %s1168_s16 }
  0xdc   :  { %1121 = vset.pattern.permute.xlu2 %v1838_v0 }
  0xe9   :  { %v57_v51 = vpop.permute.xlu0 %56 }
  0xea   :  { %v66_v18 = vmul.f32 %v57_v51, %v1276_v16 }
  0xf1   :  { %v59_v45 = vpop.permute.xlu1 %58 }
  0xf2   :  { %v67_v50 = vmul.f32 %v59_v45, %v1285_v21 }
 0x102   :  { %v265_v10 = vpop.permute.xlu1 %264 }
 0x10a   :  { %v1403_v53 = vpop.permute.xlu1 %339 }
 0x10d   :  { %v263_v55 = vpop.permute.xlu0 %262 }
 0x113   :  { %v352_v58 = vpop.permute.xlu1 %351 }
 0x114   :  { %v267_v59 = vpop.permute.xlu2 %266  ;;  %v363_v63 = vmax.f32 %v352_v58, %v1323_v46 }
 0x115   :  { %v447_v60 = vpop.permute.xlu0 %446 }
 0x116   :  { %v1406_v62 = vsub.f32 %v1339_v52, %v447_v60 }
 0x118   :  { %466 = vrot.lane.b32.xlu1 %v1406_v62, %s1172_s29 }
 0x11b   :  { %v449_v2 = vpop.permute.xlu1 %448 }
 0x11c   :  { %v459_v4 = vsub.f32 %v1349_v57, %v449_v2  ;;  %v332_v13 = vpop.permute.xlu2 %331 }
 0x11d   :  { %v343_v15 = vmin.f32 %v332_v13, %v1331_v48  ;;  %v453_v17 = vpop.permute.xlu0 %452 }
 0x11e   :  { %v461_v22 = vsub.f32 %v1356_v61, %v453_v17  ;;  %468 = vrot.lane.b32.xlu2 %v459_v4, %s1172_s29 }
 0x11f   :  { %v1415_v30 = vsub.f32 %v343_v15, %v363_v63  ;;  %v65_v63 = vmul.f32 %v55_v54, %v1287_v23  ;;  %v276_v54 = vmul.f32 %v267_v59, %v1377_v28  ;;  %v1469_v28 = vld [vmem:[%s1834_s2 + $0x70] sm:$0xff] }
 0x120   :  { %472 = vrot.lane.b32.xlu1 %v461_v22, %s1172_s29 }
 0x125   :  { %v348_v25 = vpop.permute.xlu2 %347  ;;  %v269_v2 = vpop.permute.xlu0 %268 }
 0x126   :  { %v362_v32 = vmax.f32 %v348_v25, %v1323_v46  ;;  %483 = vperm.xlu2 %1121, %v1339_v52   ;;  %v277_v23 = vmul.f32 %v269_v2, %v1366_v14 }
 0x128   :  { %v366_v34 = vsub.f32 %v342_v31, %v362_v32  ;;  %491 = vperm.xlu1 %1122, %v1394_v41  }
 0x12a   :  { %v370_v36 = vmax.f32 %v366_v34, 0.0 }
 0x12c   :  { %v1422_v38 = vmul.f32 %v370_v36, %v322_v35  ;;  %v15_v36 = vrot.slane %v1292_v24, 6 }
 0x12d   :  { %v1424_v58 = vpop.permute.xlu2 %355 }
 0x12e   :  { %495 = vperm.xlu2 %1121, %v1356_v61  }
 0x130   :  { %1123 = vset.pattern.permute.xlu1 %v1169_v5 }
 0x131   :  { %503 = vperm.xlu1 %1123, %v1339_v52  }
 0x135   :  { %v451_v43 = vpop.permute.xlu2 %450 }
 0x136   :  { %v460_v60 = vsub.f32 %v1394_v41, %v451_v43  ;;  %1124 = vset.pattern.permute.xlu2 %v1169_v5  ;;  %v1485_v43 = vld [vmem:[%s1834_s2 + $0x60] sm:$0xff] }
 0x137   :  { %507 = vperm.xlu2 %1124, %v1349_v57  }
 0x138   :  { %470 = vrot.lane.b32.xlu0 %v460_v60, %s1172_s29 }
 0x139   :  { %515 = vperm.xlu1 %1123, %v1356_v61  }
 0x13f   :  { %1125 = vset.pattern.permute.xlu2 %v1842_v7 }
 0x140   :  { %531 = vperm.xlu2 %1125, %v1339_v52   ;;  %487 = vperm.xlu0 %1105, %v1349_v57  }
 0x141   :  { %1126 = vset.pattern.permute.xlu1 %v1842_v7 }
 0x142   :  { %535 = vperm.xlu1 %1126, %v1349_v57  }
 0x148   :  { %539 = vperm.xlu2 %1125, %v1394_v41   ;;  %174 = vperm.xlu0 %1105, %v64_v33  }
 0x14a   :  { %1127 = vset.pattern.permute.xlu1 %v1840_v9 }
 0x14b   :  { %551 = vperm.xlu1 %1127, %v1339_v52   ;;  %v275_v52 = vmul.f32 %v265_v10, %v1310_v37  ;;  %v1460_v37 = vld [vmem:[%s1834_s2 + $0x68] sm:$0xff] }
 0x150   :  { %1128 = vset.pattern.permute.xlu2 %v1840_v9 }
 0x151   :  { %555 = vperm.xlu2 %1128, %v1349_v57   ;;  %v274_v57 = vmul.f32 %v263_v55, %v1326_v47 }
 0x153   :  { %559 = vperm.xlu1 %1127, %v1394_v41  }
 0x159   :  { %563 = vperm.xlu2 %1128, %v1356_v61  }
 0x15b   :  { %1129 = vset.pattern.permute.xlu1 %v1838_v0 }
 0x15c   :  { %179 = vperm.xlu1 %1129, %v65_v63  }
 0x161   :  { %1130 = vset.pattern.permute.xlu2 %v1838_v0 }
 0x162   :  { %184 = vperm.xlu2 %1130, %v66_v18  }
 0x164   :  { %189 = vperm.xlu1 %1129, %v67_v50  }
 0x16a   :  { %385 = vperm.xlu2 %1130, %v275_v52   ;;  %v1493_v52 = vld [vmem:[%s1834_s2 + $0x78] sm:$0xff] }
 0x16c   :  { %380 = vperm.xlu1 %1129, %v274_v57  }
 0x172   :  { %395 = vperm.xlu2 %1130, %v277_v23  }
 0x174   :  { %390 = vperm.xlu1 %1129, %v276_v54  }
 0x178   :  { %v469_v16 = vpop.permute.xlu2 %468 }
 0x179   :  { %v479_v51 = vmul.f32 %v469_v16, %v459_v4 }
 0x17c   :  { %589 = vperm.xlu1 %1129, %v479_v51  }
 0x180   :  { %v484_v10 = vpop.permute.xlu2 %483 }
 0x181   :  { %v498_v55 = vmin.f32 %v484_v10, %v1302_v27 }
 0x188   :  { %v496_v4 = vpop.permute.xlu2 %495 }
 0x189   :  { %v501_v17 = vmin.f32 %v496_v4, %v1302_v27 }
 0x18a   :  { %v467_v13 = vpop.permute.xlu1 %466 }
 0x18b   :  { %v478_v21 = vmul.f32 %v467_v13, %v1406_v62 }
 0x18d   :  { %584 = vperm.xlu0 %1105, %v478_v21  }
 0x191   :  { %v508_v35 = vpop.permute.xlu2 %507 }
 0x192   :  { %v473_v45 = vpop.permute.xlu1 %472 }
 0x193   :  { %v481_v47 = vmul.f32 %v473_v45, %v461_v22 }
 0x195   :  { %652 = vrot.lane.b32.xlu0 %v1460_v37, %s1168_s16  ;;  %599 = vperm.xlu1 %1129, %v481_v47   ;;  %v22_v47 = vlaneseq }
 0x19a   :  { %v1464_v14 = vpop.permute.xlu1 %491  ;;  %v532_v18 = vpop.permute.xlu2 %531 }
 0x19d   :  { %654 = vrot.lane.b32.xlu1 %v1469_v28, %s1168_s16 }
 0x1a2   :  { %v540_v16 = vpop.permute.xlu2 %539 }
 0x1a3   :  { %v504_v59 = vpop.permute.xlu1 %503  ;;  %v548_v51 = vmin.f32 %v540_v16, %v1331_v48 }
 0x1a4   :  { %v518_v62 = vmax.f32 %v504_v59, %v1297_v26  ;;  %v1507_v59 = vshrl.u32 %v22_v47, 7 }
 0x1a6   :  { %v1475_v15 = vsub.f32 %v498_v55, %v518_v62  ;;  %v1505_v55 = vand.u32 127, %v22_v47 }
 0x1a8   :  { %vm214_vm0 = vcmp.gt.s32.totalorder %v1505_v55, %v1507_v59 }
 0x1aa   :  { %v471_v22 = vpop.permute.xlu0 %470 }
 0x1ab   :  { %v480_v31 = vmul.f32 %v471_v22, %v460_v60  ;;  %v516_v25 = vpop.permute.xlu1 %515  ;;  %v17_v60 = vsub.f32 %v1292_v24, %v15_v36  ;;  %v1173_v36 = vmov 0.0  }
 0x1ac   :  { %v521_v32 = vmax.f32 %v516_v25, %v1297_v26 }
 0x1ad   :  { %594 = vperm.xlu2 %1130, %v480_v31   ;;  %v19_v50 = vrot.slane %v17_v60, 1 }
 0x1ae   :  { %v1479_v34 = vsub.f32 %v501_v17, %v521_v32  ;;  %v1510_v17 = vadd.s32 8, %v1507_v59 }
 0x1af   :  { %v21_v57 = vmul.f32 %v19_v50, %v17_v60 }
 0x1b0   :  { %vm215_vm2 = vcmp.gt.s32.totalorder %v1505_v55, %v1510_v17 }
 0x1b1   :  { %v1497_v23 = vperm.slane %v21_v57, 2  ;;  %v556_v57 = vpop.permute.xlu2 %555 }
 0x1b2   :  { %v488_v63 = vpop.permute.xlu0 %487 }
 0x1b4   :  { %v536_v33 = vpop.permute.xlu1 %535 }
 0x1b5   :  { %650 = vrot.lane.b32.xlu2 %v1485_v43, %s1168_s16 }
 0x1ba   :  { %v175_v54 = vpop.permute.xlu0 %174 }
 0x1bb   :  { %v193_v24 = vadd.f32 %v1497_v23, %v175_v54 }
 0x1bd   :  { %v552_v2 = vpop.permute.xlu1 %551  ;;  %656 = vrot.lane.b32.xlu2 %v1493_v52, %s1168_s16  ;;  %v197_v10 = vsub.f32 %v193_v24, %v1363_v12 }
 0x1bf   :  { %v206_v62 = vmul.f32 0.5, %v197_v10  ;;  %v519_v10 = vmax.f32 %v508_v35, %v1297_v26 }
 0x1c1   :  { %vm210_vm1 = vcmp.gt.f32.partialorder %v1363_v12, %v206_v62  ;;  %v567_v62 = vmax.f32 %v556_v57, %v1323_v46 }
 0x1c2   :  { %vm218_vm3 = vmand %vm210_vm1, %vm214_vm0 }
 0x1c3   :  { %v222_v60 = vsel %vm218_vm3, 1.0, %v1173_v36 }
 0x1c5   :  { %v560_v13 = vpop.permute.xlu1 %559 }
 0x1c6   :  { %v568_v21 = vmax.f32 %v560_v13, %v1323_v46  ;;  %v1530_v13 = vpop.permute.xlu2 %563 }
 0x1c8   :  { %v1502_v45 = vsub.f32 %v548_v51, %v568_v21 }
 0x1ce   :  { %v180_v4 = vpop.permute.xlu1 %179 }
 0x1cf   :  { %v194_v22 = vadd.f32 %v1497_v23, %v180_v4  ;;  %v499_v4 = vmin.f32 %v488_v63, %v1302_v27 }
 0x1d1   :  { %v198_v31 = vsub.f32 %v194_v22, %v1344_v56  ;;  %v547_v22 = vmin.f32 %v536_v33, %v1331_v48  ;;  %v526_v33 = vmax.f32 %v1475_v15, 0.0 }
 0x1d3   :  { %v207_v25 = vmul.f32 0.5, %v198_v31  ;;  %v1542_v31 = vpop.permute.xlu2 %184 }
 0x1d5   :  { %vm211_vm4 = vcmp.gt.f32.partialorder %v1344_v56, %v207_v25  ;;  %v523_v25 = vsub.f32 %v499_v4, %v519_v10  ;;  %v611_v10 = vadd.s32 64, %v1510_v17 }
 0x1d6   :  { %vm219_vm5 = vmand %vm211_vm4, %vm215_vm2  ;;  %v1520_v32 = vpop.permute.xlu1 %189 }
 0x1d7   :  { %v223_v50 = vsel %vm219_vm5, 1.0, %v1173_v36  ;;  %vm623_vm7 = vcmp.gt.s32.totalorder %v1505_v55, %v611_v10 }
 0x1d8   :  { %v1034_v54 = vpack.c.bf16 %v223_v50, %v222_v60  ;;  %v571_v60 = vsub.f32 %v547_v22, %v567_v62 }
 0x1da   :  { %1035 = vst [vmem:[#allocation2 + $0x30] sm:$0xff] %v1034_v54   ;;  %v546_v54 = vmin.f32 %v532_v18, %v1331_v48  ;;  %v610_v18 = vadd.s32 64, %v1507_v59 }
 0x1db   :  { %v1546_v0 = vpop.permute.xlu2 %385 }
 0x1dc   :  { %vm622_vm9 = vcmp.gt.s32.totalorder %v1505_v55, %v610_v18 }
 0x1de   :  { %v381_v12 = vpop.permute.xlu1 %380 }
 0x1df   :  { %v398_v16 = vadd.f32 %v381_v12, %v1497_v23  ;;  %v527_v12 = vmax.f32 %v523_v25, 0.0 }
 0x1e1   :  { %v1525_v51 = vld [vmem:[#allocation2 + $0x30] sm:$0xf]  ;;  %v1527_v24 = vld [vmem:[#allocation2 + $0x30] sm:$0xf0]  ;;  %v402_v56 = vsub.f32 %v398_v16, %v1422_v38  ;;  %v575_v16 = vmax.f32 %v571_v60, 0.0 }
 0x1e3   :  { %v1532_v21 = vmul.f32 0.5, %v402_v56  ;;  %v566_v56 = vmax.f32 %v552_v2, %v1323_v46  ;;  %v579_v9 = vmul.f32 %v575_v16, %v527_v12  ;;  %v1551_v22 = vpop.permute.xlu2 %395 }
 0x1e5   :  { %vm414_vm6 = vcmp.gt.f32.partialorder %v1422_v38, %v1532_v21  ;;  %v570_v57 = vsub.f32 %v546_v54, %v566_v56 }
 0x1e6   :  { %v1536_v47 = vpop.permute.xlu1 %390 }
 0x1e7   :  { %v574_v7 = vmax.f32 %v570_v57, 0.0 }
 0x1e9   :  { %v578_v25 = vmul.f32 %v574_v7, %v526_v33 }
 0x1ee   :  { %v590_v50 = vpop.permute.xlu1 %589 }
 0x1ef   :  { %v603_v35 = vadd.f32 %v590_v50, %v1497_v23 }
 0x1f1   :  { %v607_v63 = vsub.f32 %v603_v35, %v579_v9 }
 0x1f3   :  { %v615_v62 = vmul.f32 0.5, %v607_v63 }
 0x1f5   :  { %vm619_vm8 = vcmp.gt.f32.partialorder %v579_v9, %v615_v62 }
 0x1f6   :  { %vm627_vm10 = vmand %vm619_vm8, %vm623_vm7 }
 0x1f7   :  { %v631_v12 = vsel %vm627_vm10, 1.0, %v1173_v36 }
 0x1ff   :  { %v585_v4 = vpop.permute.xlu0 %584 }
 0x200   :  { %v602_v2 = vadd.f32 %v585_v4, %v1497_v23 }
 0x202   :  { %v606_v60 = vsub.f32 %v602_v2, %v578_v25  ;;  %v1845_v2 = vmov 1  }
 0x204   :  { %v614_v50 = vmul.f32 0.5, %v606_v60 }
 0x206   :  { %vm618_vm11 = vcmp.gt.f32.partialorder %v578_v25, %v614_v50  ;;  %v1844_v25 = vmov 3  }
 0x207   :  { %vm626_vm12 = vmand %vm618_vm11, %vm622_vm9  ;;  %v1557_v15 = vpop.permute.xlu1 %599  ;;  %v653_v54 = vpop.permute.xlu0 %652 }
 0x208   :  { %v630_v16 = vsel %vm626_vm12, 1.0, %v1173_v36  ;;  %v663_v7 = vsub.f32 %v1460_v37, %v653_v54  ;;  %v1562_v56 = vpop.permute.xlu2 %594  ;;  %v166_v54 = vmax.f32 %v1372_v20, 0.0  ;;  %v406_v20 = vadd.s32 32, %v1507_v59 }
 0x209   :  { %v1046_v35 = vpack.c.bf16 %v631_v12, %v630_v16  ;;  %v195_v16 = vadd.f32 %v1497_v23, %v1542_v31  ;;  %v399_v31 = vadd.f32 %v1546_v0, %v1497_v23  ;;  %v576_v0 = vmax.f32 %v1502_v45, 0.0 }
 0x20a   :  { %672 = vrot.lane.b32.xlu1 %v663_v7, %s1172_s29  ;;  %vm418_vm14 = vcmp.gt.s32.totalorder %v1505_v55, %v406_v20  ;;  %v296_v20 = vmin.f32 %v1401_v49, %v1302_v27 }
 0x20b   :  { %1060 = vst [vmem:[#allocation2 + $0x8] sm:$0xff] %v1046_v35   ;;  %vm422_vm0 = vmand %vm414_vm6, %vm418_vm14 }
 0x20f   :  { %v655_v9 = vpop.permute.xlu1 %654 }
 0x210   :  { %v664_v57 = vsub.f32 %v1469_v28, %v655_v9  ;;  %v651_v63 = vpop.permute.xlu2 %650  ;;  %v295_v9 = vmin.f32 %v1370_v19, %v1302_v27 }
 0x211   :  { %v662_v33 = vsub.f32 %v1485_v43, %v651_v63 }
 0x212   :  { %v1567_v10 = vld [vmem:[#allocation2 + $0x8] sm:$0xf]  ;;  %v1569_v62 = vld [vmem:[#allocation2 + $0x8] sm:$0xf0]  ;;  %674 = vrot.lane.b32.xlu2 %v664_v57, %s1172_s29  ;;  %687 = vperm.xlu1 %1129, %v1485_v43  }
 0x213   :  { %670 = vrot.lane.b32.xlu0 %v662_v33, %s1172_s29 }
 0x218   :  { %v657_v4 = vpop.permute.xlu2 %656 }
 0x219   :  { %v665_v18 = vsub.f32 %v1493_v52, %v657_v4  ;;  %v371_v4 = vmax.f32 %v1415_v30, 0.0 }
 0x21a   :  { %691 = vperm.xlu2 %1130, %v1460_v37   ;;  %699 = vperm.xlu1 %1129, %v1493_v52  }
 0x21b   :  { %676 = vrot.lane.b32.xlu0 %v665_v18, %s1172_s29 }
 0x222   :  { %1134 = vset.pattern.permute.xlu1 %v1169_v5  ;;  %1132 = vset.pattern.permute.xlu2 %v1169_v5 }
 0x223   :  { %695 = vperm.xlu0 %1105, %v1469_v28   ;;  %715 = vperm.xlu1 %1134, %v1469_v28  }
 0x224   :  { %707 = vperm.xlu2 %1132, %v1485_v43  }
 0x22b   :  { %1131 = vset.pattern.permute.xlu0 %v1169_v5  ;;  %1135 = vset.pattern.permute.xlu1 %v1844_v25 }
 0x22c   :  { %98 = vperm.xlu0 %1131, %v1200_v1   ;;  %735 = vperm.xlu1 %1135, %v1485_v43   ;;  %v1846_v1 = vmov 2  }
 0x22d   :  { %719 = vperm.xlu2 %1132, %v1493_v52  }
 0x234   :  { %303 = vperm.xlu0 %1131, %v1227_v6   ;;  %747 = vperm.xlu1 %1135, %v1493_v52  }
 0x235   :  { %1136 = vset.pattern.permute.xlu2 %v1844_v25 }
 0x236   :  { %739 = vperm.xlu2 %1136, %v1460_v37  }
 0x23c   :  { %511 = vperm.xlu0 %1131, %v1394_v41   ;;  %1139 = vset.pattern.permute.xlu1 %v1845_v2 }
 0x23d   :  { %759 = vperm.xlu1 %1139, %v1460_v37  }
 0x23e   :  { %1138 = vset.pattern.permute.xlu2 %v1845_v2 }
 0x23f   :  { %755 = vperm.xlu2 %1138, %v1485_v43  }
 0x244   :  { %711 = vperm.xlu0 %1131, %v1460_v37  }
 0x245   :  { %1140 = vset.pattern.permute.xlu1 %v1846_v1 }
 0x247   :  { %763 = vperm.xlu2 %1138, %v1469_v28  }
 0x24c   :  { %1133 = vset.pattern.permute.xlu0 %v1844_v25  ;;  %v407_v25 = vadd.s32 32, %v1510_v17 }
 0x24d   :  { %131 = vperm.xlu0 %1133, %v1213_v3  }
 0x24e   :  { %vm419_vm15 = vcmp.gt.s32.totalorder %v1505_v55, %v407_v25 }
 0x24f   :  { %1141 = vset.pattern.permute.xlu2 %v1846_v1 }
 0x255   :  { %335 = vperm.xlu0 %1133, %v1236_v8  }
 0x25d   :  { %543 = vperm.xlu0 %1133, %v1356_v61  }
 0x265   :  { %743 = vperm.xlu0 %1133, %v1469_v28  }
 0x26c   :  { %v675_v37 = vpop.permute.xlu2 %674 }
 0x26d   :  { %1137 = vset.pattern.permute.xlu0 %v1845_v2  ;;  %v684_v43 = vmul.f32 %v675_v37, %v664_v57 }
 0x26e   :  { %359 = vperm.xlu0 %1137, %v1257_v11   ;;  %v87_v11 = vmin.f32 %v1305_v29, %v1302_v27 }
 0x274   :  { %v1650_v45 = vpop.permute.xlu2 %691 }
 0x276   :  { %767 = vperm.xlu0 %1137, %v1493_v52  }
 0x27c   :  { %v673_v5 = vpop.permute.xlu1 %672 }
 0x27d   :  { %v683_v6 = vmul.f32 %v673_v5, %v663_v7 }
 0x27e   :  { %1142 = vset.pattern.permute.xlu0 %v1846_v1  ;;  %v500_v1 = vmin.f32 %v1464_v14, %v1302_v27  ;;  %v426_v14 = vsel %vm422_vm0, 1.0, %v1173_v36 }
 0x27f   :  { %793 = vperm.xlu2 %1141, %v683_v6  }
 0x284   :  { %v1639_v37 = vpop.permute.xlu1 %687 }
 0x285   :  { %v671_v3 = vpop.permute.xlu0 %670 }
 0x286   :  { %v682_v41 = vmul.f32 %v671_v3, %v662_v33 }
 0x288   :  { %788 = vperm.xlu1 %1140, %v682_v41  }
 0x28d   :  { %v677_v8 = vpop.permute.xlu0 %676 }
 0x28e   :  { %v685_v61 = vmul.f32 %v677_v8, %v665_v18  ;;  %v604_v8 = vadd.f32 %v1562_v56, %v1497_v23 }
 0x290   :  { %798 = vperm.xlu1 %1140, %v684_v43   ;;  %803 = vperm.xlu2 %1141, %v685_v61  }
 0x295   :  { %v1610_v28 = vpop.permute.xlu0 %695 }
 0x29e   :  { %v99_v60 = vpop.permute.xlu0 %98 }
 0x29f   :  { %v108_v52 = vmax.f32 %v99_v60, %v1297_v26 }
 0x2a1   :  { %v112_v50 = vsub.f32 %v87_v11, %v108_v52  ;;  %v1656_v52 = vpop.permute.xlu1 %699 }
 0x2a3   :  { %v116_v12 = vmax.f32 %v112_v50, 0.0 }
 0x2a5   :  { %v1618_v7 = vmul.f32 %v166_v54, %v116_v12  ;;  %v159_v12 = vmax.f32 %v1313_v40, %v1323_v46  ;;  %v196_v40 = vadd.f32 %v1497_v23, %v1520_v32 }
 0x2a6   :  { %v304_v35 = vpop.permute.xlu0 %303 }
 0x2a7   :  { %v199_v57 = vsub.f32 %v195_v16, %v1618_v7  ;;  %v315_v63 = vmax.f32 %v304_v35, %v1297_v26  ;;  %v1664_v16 = vpop.permute.xlu2 %707 }
 0x2a9   :  { %v208_v29 = vmul.f32 0.5, %v199_v57  ;;  %v319_v33 = vsub.f32 %v295_v9, %v315_v63  ;;  %v316_v57 = vmax.f32 %v1399_v42, %v1297_v26  ;;  %v117_v63 = vmax.f32 %v1319_v44, 0.0  ;;  %v1682_v44 = vpop.permute.xlu1 %715 }
 0x2aa   :  { %v364_v42 = vmax.f32 %v1424_v58, %v1323_v46 }
 0x2ab   :  { %vm212_vm13 = vcmp.gt.f32.partialorder %v1618_v7, %v208_v29  ;;  %v323_v18 = vmax.f32 %v319_v33, 0.0  ;;  %v1671_v33 = vadd.s32 16, %v1507_v59  ;;  %v320_v25 = vsub.f32 %v296_v20, %v316_v57 }
 0x2ac   :  { %v605_v57 = vadd.f32 %v1557_v15, %v1497_v23 }
 0x2ad   :  { %v375_v2 = vmul.f32 %v371_v4, %v323_v18  ;;  %v1678_v18 = vadd.s32 24, %v1507_v59  ;;  %vm216_vm4 = vcmp.gt.s32.totalorder %v1505_v55, %v1671_v33 }
 0x2ae   :  { %v512_v19 = vpop.permute.xlu0 %511  ;;  %vm220_vm6 = vmand %vm212_vm13, %vm216_vm4 }
 0x2af   :  { %v403_v5 = vsub.f32 %v399_v31, %v375_v2  ;;  %v520_v30 = vmax.f32 %v512_v19, %v1297_v26  ;;  %vm217_vm5 = vcmp.gt.s32.totalorder %v1505_v55, %v1678_v18 }
 0x2b1   :  { %v411_v6 = vmul.f32 0.5, %v403_v5  ;;  %v524_v3 = vsub.f32 %v500_v1, %v520_v30  ;;  %v1687_v1 = vpop.permute.xlu2 %719  ;;  %v324_v30 = vmax.f32 %v320_v25, 0.0 }
 0x2b3   :  { %vm415_vm1 = vcmp.gt.f32.partialorder %v375_v2, %v411_v6  ;;  %v528_v41 = vmax.f32 %v524_v3, 0.0  ;;  %v400_v6 = vadd.f32 %v1536_v47, %v1497_v23  ;;  %v224_v3 = vsel %vm220_vm6, 1.0, %v1173_v36 }
 0x2b4   :  { %vm423_vm2 = vmand %vm415_vm1, %vm419_vm15  ;;  %v529_v47 = vmax.f32 %v1479_v34, 0.0 }
 0x2b5   :  { %v427_v43 = vsel %vm423_vm2, 1.0, %v1173_v36  ;;  %v1645_v61 = vmul.f32 %v576_v0, %v528_v41 }
 0x2b6   :  { %v1040_v60 = vpack.c.bf16 %v427_v43, %v426_v14  ;;  %v1647_v11 = vpop.permute.xlu0 %711  ;;  %v569_v43 = vmax.f32 %v1530_v13, %v1323_v46  ;;  %v613_v13 = vadd.s32 64, %v1678_v18 }
 0x2b7   :  { %v608_v38 = vsub.f32 %v604_v8, %v1645_v61 }
 0x2b8   :  { %1058 = vst [vmem:[#allocation2 + $0x18] sm:$0xff] %v1040_v60   ;;  %vm625_vm11 = vcmp.gt.s32.totalorder %v1505_v55, %v613_v13 }
 0x2b9   :  { %v1652_v21 = vmul.f32 0.5, %v608_v38  ;;  %v740_v29 = vpop.permute.xlu2 %739  ;;  %v1700_v38 = vpop.permute.xlu1 %735 }
 0x2bb   :  { %vm620_vm3 = vcmp.gt.f32.partialorder %v1645_v61, %v1652_v21  ;;  %v325_v61 = vmax.f32 %v1386_v39, 0.0  ;;  %v408_v21 = vadd.s32 32, %v1671_v33  ;;  %v703_v39 = vmin.f32 %v1650_v45, %v1302_v27 }
 0x2bc   :  { %v705_v45 = vmin.f32 %v1656_v52, %v1302_v27  ;;  %v702_v52 = vmin.f32 %v1639_v37, %v1302_v27  ;;  %v724_v37 = vmax.f32 %v1682_v44, %v1297_v26 }
 0x2bd   :  { %vm420_vm15 = vcmp.gt.s32.totalorder %v1505_v55, %v408_v21 }
 0x2bf   :  { %v1658_v56 = vld [vmem:[#allocation2 + $0x18] sm:$0xf]  ;;  %v1660_v50 = vld [vmem:[#allocation2 + $0x18] sm:$0xf0]  ;;  %v132_v54 = vpop.permute.xlu0 %131 }
 0x2c0   :  { %v138_v35 = vmin.f32 %v132_v54, %v1331_v48 }
 0x2c1   :  { %v748_v34 = vpop.permute.xlu1 %747  ;;  %v756_v15 = vpop.permute.xlu2 %755 }
 0x2c2   :  { %v163_v9 = vsub.f32 %v138_v35, %v159_v12  ;;  %v612_v35 = vadd.s32 64, %v1671_v33  ;;  %v770_v13 = vmax.f32 %v756_v15, %v1323_v46 }
 0x2c4   :  { %v167_v4 = vmax.f32 %v163_v9, 0.0  ;;  %vm624_vm10 = vcmp.gt.s32.totalorder %v1505_v55, %v612_v35 }
 0x2c5   :  { %vm628_vm12 = vmand %vm620_vm3, %vm624_vm10 }
 0x2c6   :  { %v171_v31 = vmul.f32 %v167_v4, %v117_v63 }
 0x2c7   :  { %v336_v2 = vpop.permute.xlu0 %335 }
 0x2c8   :  { %v200_v19 = vsub.f32 %v196_v40, %v171_v31  ;;  %v344_v49 = vmin.f32 %v336_v2, %v1331_v48  ;;  %v632_v2 = vsel %vm628_vm12, 1.0, %v1173_v36 }
 0x2ca   :  { %v209_v32 = vmul.f32 0.5, %v200_v19  ;;  %v368_v5 = vsub.f32 %v344_v49, %v364_v42 }
 0x2cc   :  { %vm213_vm7 = vcmp.gt.f32.partialorder %v171_v31, %v209_v32  ;;  %v372_v58 = vmax.f32 %v368_v5, 0.0  ;;  %v345_v32 = vmin.f32 %v1403_v53, %v1331_v48  ;;  %v723_v53 = vmax.f32 %v1647_v11, %v1297_v26 }
 0x2cd   :  { %vm221_vm8 = vmand %vm213_vm7, %vm217_vm5  ;;  %v725_v11 = vmax.f32 %v1687_v1, %v1297_v26 }
 0x2ce   :  { %v225_v0 = vsel %vm221_vm8, 1.0, %v1173_v36  ;;  %v376_v41 = vmul.f32 %v372_v58, %v324_v30  ;;  %v760_v58 = vpop.permute.xlu1 %759  ;;  %v727_v35 = vsub.f32 %v703_v39, %v723_v53  ;;  %v815_v53 = vadd.s32 96, %v1510_v17 }
 0x2cf   :  { %v1037_v14 = vpack.c.bf16 %v225_v0, %v224_v3  ;;  %v544_v8 = vpop.permute.xlu0 %543  ;;  %v401_v0 = vadd.f32 %v1551_v22, %v1497_v23 }
 0x2d0   :  { %v404_v60 = vsub.f32 %v400_v6, %v376_v41  ;;  %v549_v7 = vmin.f32 %v544_v8, %v1331_v48  ;;  %v764_v6 = vpop.permute.xlu2 %763  ;;  %v771_v8 = vmax.f32 %v760_v58, %v1323_v46  ;;  %vm827_vm4 = vcmp.gt.s32.totalorder %v1505_v55, %v815_v53 }
 0x2d1   :  { %1057 = vst [vmem:[#allocation2] sm:$0xff] %v1037_v14   ;;  %v751_v14 = vmin.f32 %v740_v29, %v1331_v48 }
 0x2d2   :  { %v412_v54 = vmul.f32 0.5, %v404_v60  ;;  %v573_v12 = vsub.f32 %v549_v7, %v569_v43  ;;  %v409_v43 = vadd.s32 32, %v1678_v18 }
 0x2d3   :  { %v775_v29 = vsub.f32 %v751_v14, %v771_v8  ;;  %v704_v14 = vmin.f32 %v1610_v28, %v1302_v27 }
 0x2d4   :  { %vm416_vm9 = vcmp.gt.f32.partialorder %v376_v41, %v412_v54  ;;  %v577_v9 = vmax.f32 %v573_v12, 0.0  ;;  %vm421_vm0 = vcmp.gt.s32.totalorder %v1505_v55, %v409_v43  ;;  %v731_v54 = vmax.f32 %v727_v35, 0.0 }
 0x2d5   :  { %vm424_vm1 = vmand %vm416_vm9, %vm420_vm15  ;;  %v779_v41 = vmax.f32 %v775_v29, 0.0  ;;  %v728_v44 = vsub.f32 %v704_v14, %v724_v37 }
 0x2d6   :  { %v581_v63 = vmul.f32 %v577_v9, %v529_v47 }
 0x2d7   :  { %v1707_v4 = vpop.permute.xlu0 %743  ;;  %v732_v35 = vmax.f32 %v728_v44, 0.0 }
 0x2d8   :  { %v1710_v20 = vld [vmem:[#allocation2] sm:$0xf]  ;;  %v1712_v40 = vld [vmem:[#allocation2] sm:$0xf0]  ;;  %v609_v31 = vsub.f32 %v605_v57, %v581_v63  ;;  %v752_v21 = vmin.f32 %v1707_v4, %v1331_v48 }
 0x2da   :  { %v617_v25 = vmul.f32 0.5, %v609_v31  ;;  %v753_v31 = vmin.f32 %v748_v34, %v1331_v48  ;;  %v729_v34 = vsub.f32 %v705_v45, %v725_v11 }
 0x2dc   :  { %vm621_vm13 = vcmp.gt.f32.partialorder %v581_v63, %v617_v25  ;;  %v750_v63 = vmin.f32 %v1700_v38, %v1331_v48  ;;  %v794_v25 = vpop.permute.xlu2 %793 }
 0x2dd   :  { %vm629_vm14 = vmand %vm621_vm13, %vm625_vm11 }
 0x2de   :  { %v633_v42 = vsel %vm629_vm14, 1.0, %v1173_v36 }
 0x2df   :  { %v1049_v19 = vpack.c.bf16 %v633_v42, %v632_v2  ;;  %v428_v2 = vsel %vm424_vm1, 1.0, %v1173_v36  ;;  %v722_v42 = vmax.f32 %v1664_v16, %v1297_v26  ;;  %v733_v16 = vmax.f32 %v729_v34, 0.0 }
 0x2e0   :  { %v360_v49 = vpop.permute.xlu0 %359 }
 0x2e1   :  { %1061 = vst [vmem:[#allocation2 + $0x20] sm:$0xff] %v1049_v19   ;;  %v365_v5 = vmax.f32 %v360_v49, %v1323_v46  ;;  %v807_v19 = vadd.f32 %v794_v25, %v1497_v23  ;;  %v774_v49 = vsub.f32 %v750_v63, %v770_v13  ;;  %v816_v63 = vadd.s32 96, %v1671_v33 }
 0x2e3   :  { %v369_v30 = vsub.f32 %v345_v32, %v365_v5  ;;  %v783_v32 = vmul.f32 %v779_v41, %v731_v54  ;;  %v726_v5 = vsub.f32 %v702_v52, %v722_v42  ;;  %vm828_vm12 = vcmp.gt.s32.totalorder %v1505_v55, %v816_v63 }
 0x2e5   :  { %v373_v3 = vmax.f32 %v369_v30, 0.0  ;;  %v811_v30 = vsub.f32 %v807_v19, %v783_v32 }
 0x2e7   :  { %v377_v60 = vmul.f32 %v373_v3, %v325_v61  ;;  %v772_v61 = vmax.f32 %v764_v6, %v1323_v46  ;;  %v778_v3 = vmax.f32 %v774_v49, 0.0  ;;  %v819_v43 = vmul.f32 0.5, %v811_v30 }
 0x2e8   :  { %v1732_v7 = vld [vmem:[#allocation2 + $0x20] sm:$0xf]  ;;  %v1734_v12 = vld [vmem:[#allocation2 + $0x20] sm:$0xf0]  ;;  %v768_v47 = vpop.permute.xlu0 %767 }
 0x2e9   :  { %v405_v22 = vsub.f32 %v401_v0, %v377_v60  ;;  %v773_v57 = vmax.f32 %v768_v47, %v1323_v46  ;;  %v730_v0 = vmax.f32 %v726_v5, 0.0  ;;  %v776_v6 = vsub.f32 %v752_v21, %v772_v61 }
 0x2ea   :  { %v804_v8 = vpop.permute.xlu2 %803  ;;  %vm823_vm5 = vcmp.gt.f32.partialorder %v783_v32, %v819_v43 }
 0x2eb   :  { %v413_v9 = vmul.f32 0.5, %v405_v22  ;;  %v777_v38 = vsub.f32 %v753_v31, %v773_v57  ;;  %v809_v4 = vadd.f32 %v804_v8, %v1497_v23  ;;  %v814_v22 = vadd.s32 96, %v1507_v59  ;;  %vm831_vm7 = vmand %vm823_vm5, %vm827_vm4 }
 0x2ec   :  { %v782_v47 = vmul.f32 %v778_v3, %v730_v0  ;;  %v780_v28 = vmax.f32 %v776_v6, 0.0  ;;  %v835_v45 = vsel %vm831_vm7, 1.0, %v1173_v36 }
 0x2ed   :  { %vm417_vm2 = vcmp.gt.f32.partialorder %v377_v60, %v413_v9  ;;  %v781_v58 = vmax.f32 %v777_v38, 0.0  ;;  %vm826_vm6 = vcmp.gt.s32.totalorder %v1505_v55, %v814_v22  ;;  %v817_v9 = vadd.s32 96, %v1678_v18 }
 0x2ee   :  { %vm425_vm3 = vmand %vm417_vm2, %vm421_vm0  ;;  %v784_v57 = vmul.f32 %v780_v28, %v732_v35 }
 0x2ef   :  { %v429_v1 = vsel %vm425_vm3, 1.0, %v1173_v36  ;;  %v785_v46 = vmul.f32 %v781_v58, %v733_v16  ;;  %vm829_vm10 = vcmp.gt.s32.totalorder %v1505_v55, %v817_v9  ;;  %v1794_v55 = vmov 1.0  }
 0x2f0   :  { %v1043_v15 = vpack.c.bf16 %v429_v1, %v428_v2 }
 0x2f1   :  { %v813_v27 = vsub.f32 %v809_v4, %v785_v46 }
 0x2f2   :  { %1059 = vst [vmem:[#allocation2 + $0x10] sm:$0xff] %v1043_v15   ;;  %v1796_v15 = vmov (%p986_p0), 1.0  }
 0x2f3   :  { %v821_v11 = vmul.f32 0.5, %v813_v27 }
 0x2f5   :  { %vm825_vm11 = vcmp.gt.f32.partialorder %v785_v46, %v821_v11 }
 0x2f6   :  { %vm833_vm13 = vmand %vm825_vm11, %vm829_vm10 }
 0x2f7   :  { %v837_v54 = vsel %vm833_vm13, 1.0, %v1173_v36 }
 0x2f9   :  { %v1765_v60 = vld [vmem:[#allocation2 + $0x10] sm:$0xf]  ;;  %v1767_v39 = vld [vmem:[#allocation2 + $0x10] sm:$0xf0] }
 0x2fa   :  { %v789_v48 = vpop.permute.xlu1 %788 }
 0x2fb   :  { %v806_v26 = vadd.f32 %v789_v48, %v1497_v23 }
 0x2fd   :  { %v810_v17 = vsub.f32 %v806_v26, %v782_v47 }
 0x2ff   :  { %v818_v29 = vmul.f32 0.5, %v810_v17 }
 0x301   :  { %vm822_vm8 = vcmp.gt.f32.partialorder %v782_v47, %v818_v29 }
 0x302   :  { %vm830_vm9 = vmand %vm822_vm8, %vm826_vm6  ;;  %v799_v59 = vpop.permute.xlu1 %798 }
 0x303   :  { %v834_v13 = vsel %vm830_vm9, 1.0, %v1173_v36  ;;  %v808_v31 = vadd.f32 %v799_v59, %v1497_v23 }
 0x304   :  { %v1052_v25 = vpack.c.bf16 %v835_v45, %v834_v13 }
 0x305   :  { %v812_v41 = vsub.f32 %v808_v31, %v784_v57 }
 0x306   :  { %1062 = vst [vmem:[#allocation2 + $0x28] sm:$0xff] %v1052_v25  }
 0x307   :  { %v820_v18 = vmul.f32 0.5, %v812_v41 }
 0x309   :  { %vm824_vm14 = vcmp.gt.f32.partialorder %v784_v57, %v820_v18 }
 0x30a   :  { %vm832_vm15 = vmand %vm824_vm14, %vm828_vm12 }
 0x30b   :  { %v836_v2 = vsel %vm832_vm15, 1.0, %v1173_v36 }
 0x30c   :  { %v1055_v1 = vpack.c.bf16 %v837_v54, %v836_v2 }
 0x30d   :  { %v1783_v33 = vld [vmem:[#allocation2 + $0x28] sm:$0xf]  ;;  %v1785_v23 = vld [vmem:[#allocation2 + $0x28] sm:$0xf0] }
 0x30e   :  { %1063 = vst [vmem:[#allocation2 + $0x38] sm:$0xff] %v1055_v1  }
 0x311   :  { %981 = sbr.rel (!%p986_p0) target bundleno = 1272 (0x4f8), region = 29 }
 0x315   :  { %v1787_v42 = vld [vmem:[#allocation2 + $0x38] sm:$0xf]  ;;  %v1789_v52 = vld [vmem:[#allocation2 + $0x38] sm:$0xf0] }
 0x316 LB: > { %v1019_v36 = vor.u32 %v1789_v52, %v1787_v42  ;;  %v1015_v19 = vor.u32 %v1785_v23, %v1783_v33  ;;  %v1011_v38 = vor.u32 %v1734_v12, %v1732_v7  ;;  %v1007_v34 = vor.u32 %v1569_v62, %v1567_v10  ;;  %s968_s21 = sadd.s32 2, %s1161_s21   ;;  %s1161_s21 = sphi %s1798_s21, %s968_s21   ;;  %v1157_v15 = vphi %v1796_v15, %v1847_v15  }
 0x317   : > { %v1003_v49 = vor.u32 %v1767_v39, %v1765_v60  ;;  %v999_v32 = vor.u32 %v1660_v50, %v1658_v56  ;;  %v995_v5 = vor.u32 %v1712_v40, %v1710_v20  ;;  %v991_v30 = vor.u32 %v1527_v24, %v1525_v51  ;;  %p868_p2 = scmp.le.s32.totalorder %s968_s21, %s1836_s0 }
 0x318   : > { %922 = vmatpush.bf16.msra.mxu0 %v1019_v36  ;;  %938 = vmatpush.bf16.msra.mxu1 %v1019_v36  ;;  %v873_v58 = vpack.c.bf16 %v1157_v15, %v1157_v15  ;;  %v1174_v21 = vmov 1.0|1.0   ;;  %v1175_v0 = vmov 1.0   ;;  %vm955_vm4 = vcmask 1040384  }
 0x31c   : > { %923 = vmatpush.bf16.msra.mxu0 %v1015_v19  ;;  %939 = vmatpush.bf16.msra.mxu1 %v1015_v19 }
 0x320   : > { %924 = vmatpush.bf16.msra.mxu0 %v1011_v38  ;;  %940 = vmatpush.bf16.msra.mxu1 %v1011_v38 }
 0x324   : > { %925 = vmatpush.bf16.msra.mxu0 %v1007_v34  ;;  %941 = vmatpush.bf16.msra.mxu1 %v1007_v34 }
 0x328   : > { %926 = vmatpush.bf16.msra.mxu0 %v1003_v49  ;;  %942 = vmatpush.bf16.msra.mxu1 %v1003_v49 }
 0x32c   : > { %927 = vmatpush.bf16.msra.mxu0 %v999_v32  ;;  %943 = vmatpush.bf16.msra.mxu1 %v999_v32 }
 0x330   : > { %928 = vmatpush.bf16.msra.mxu0 %v995_v5  ;;  %944 = vmatpush.bf16.msra.mxu1 %v995_v5 }
 0x334   : > { %929 = vmatpush.bf16.msra.mxu0 %v991_v30  ;;  %945 = vmatpush.bf16.msra.mxu1 %v991_v30 }
 0x337   : > { %930 = vmatmul.bf16.vlgmr.msra.gmra.mxu0 %v873_v58 }
 0x3b4   : > { %v931_v61 = vpop.f32.mrf.mxu0 }
 0x3b5   : > { %vm935_vm0 = vcmp.gt.f32.partialorder %v931_v61, 0.0 }
 0x3b6   : > { %vm1020_vm1 = vmneg %vm935_vm0 }
 0x3b7   : > { %vm1022_vm2 = vmpackc.low %vm1020_vm1, %vm1020_vm1 }
 0x3b8   : > { %1023 = vmatmul.msk.bf16.vlgmr.msra.gmra.mxu1 %vm1022_vm2, %v1174_v21 }
 0x3bc   : > { %v933_v16 = vpop.f32.mrf.mxu0 }
 0x435   : > { %v947_v3 = vpop.f32.mrf.mxu1 }
 0x436   : > { %vm951_vm3 = vcmp.gt.f32.partialorder %v947_v3, 0.0 }
 0x437   : > { %v952_v37 = vsel %vm951_vm3, 0.0, %v1175_v0  }
 0x438   : > { %v953_v14 = vsub.f32 %v952_v37, %v1157_v15  ;;  %v1847_v15 = vmov %v952_v37 }
 0x43a   : > { %v954_v8 = vand.u32 2147483647, %v953_v14 }
 0x43c   : > { %v956_v53 = vsel %vm955_vm4, %v954_v8, 0.0 }
 0x43d   : > { %v949_v43 = vpop.f32.mrf.mxu1  ;;  %957 = vadd.xlane.f32.xlu0 %v956_v53 }
 0x4b0   : > { %v958_v46 = vpop.xlane.xlu0 %957 }
 0x4b1   : > { %v959_v6 = vrot.slane %v958_v46, 4 }
 0x4b3   : > { %v960_v48 = vadd.f32 %v959_v6, %v958_v46 }
 0x4b5   : > { %v961_v4 = vrot.slane %v960_v48, 2 }
 0x4b7   : > { %v962_v22 = vadd.f32 %v961_v4, %v960_v48 }
 0x4b9   : > { %v963_v47 = vrot.slane %v962_v22, 1 }
 0x4bb   : > { %v964_v26 = vadd.f32 %v963_v47, %v962_v22 }
 0x4bd   : > { %1064 = vpush %v964_v26 }
 0x4ee   : > { %s1065_s22 = spop %1064 }
 0x4ef   : > { %p966_p1 = scmp.gt.f32.partialorder %s1065_s22, 0.0 }
 0x4f1   : > { %p869_p3 = pnand %p966_p1, %p868_p2 }
 0x4f2   :  { %v1848_v55 = vmov (%p869_p3), %v952_v37 }
 0x4f3   :  { %872 = sbr.rel (!%p869_p3) target bundleno = 790 (0x316), region = 35 }
 0x4f8 PF:  { %vm1066_vm5 = vcmp.lt.s32.totalorder %v1165_v55, 0  ;;  %v1067_v44 = vceil.f32 %v1165_v55  ;;  %v1068_v27 = vfloor.f32 %v1165_v55  ;;  %v1165_v55 = vphi %v1794_v55, %v1848_v55  }
 0x4fa   :  { %v1069_v17 = vsel %vm1066_vm5, %v1067_v44, %v1068_v27 }
 0x4fb   :  { %v1070_v28 = vcvt.f32.s32 %v1069_v17 }
 0x4fd   :  { %970 = vst [vmem:[%s1837_s3] sm:$0x1] %v1070_v28 }

</bundles_post_ra>
